<compile_context>
chip_gen: v6e
topology: v6e:2x2x1
jax: 0.10.0
libtpu: 0.0.40
codegen_flags: <defaults>
</compile_context>

<pallas_src>
import jax
import jax.numpy as jnp
from jax.experimental import pallas as pl
from jax.experimental.pallas import tpu as pltpu

EPS = 1e-5


# ----------------------------------------------------------------------------
# Fused kernel: conv1->bn1->relu->conv2->bn2->relu->flatten->fc1 (K-reduction)
#               ->bn3->relu->fc2->bn4->relu->fc3->bn5->relu->fc4
# Grid: (i over batch tiles [parallel], k over time blocks [arbitrary]).
# ----------------------------------------------------------------------------
def cnn_bn_fused_kernel(x_ref, a1_ref, c1_ref, a2_ref, c2_ref,
                        wf1_ref, c3_ref, wf2_ref, c4_ref,
                        wf3_ref, c5_ref, wf4_ref, b4_ref,
                        o_ref, acc_ref):
    k = pl.program_id(1)

    @pl.when(k == 0)
    def _init():
        acc_ref[...] = jnp.zeros_like(acc_ref)

    tt, tb, feat = x_ref.shape                       # (T_BLOCK, TILE_B, F)
    x2 = x_ref[...].reshape(tt * tb, feat)           # time-major rows t*tb + b

    # conv1 + bn1 (scale folded into a1, bias+shift in c1) + relu.
    # For tiny F this is F VPU broadcast multiply-adds (lane-dense (N,64)),
    # avoiding a nearly-empty MXU pass on a 4-deep K dimension.
    if feat <= 8:
        h = x2[:, 0:1] * a1_ref[0:1, :]
        for f in range(1, feat):
            h = h + x2[:, f:f + 1] * a1_ref[f:f + 1, :]
    else:
        h = jnp.dot(x2, a1_ref[...], preferred_element_type=jnp.float32)
    h = jnp.maximum(h + c1_ref[...], 0.0)            # (tt*tb, 64) f32

    # conv2 + bn2 (folded) + relu.
    h = jnp.dot(h.astype(jnp.bfloat16), a2_ref[...],
                preferred_element_type=jnp.float32)
    h = jnp.maximum(h + c2_ref[...], 0.0)            # (tt*tb, 256) f32
    hb = h.astype(jnp.bfloat16)

    # fc1 partial contraction for this time block (rows of wf1 are permuted to
    # t*256 + c order at fold time, bn3 scale folded into its columns).
    part = jnp.dot(hb[0:tb, :], wf1_ref[0:256, :],
                   preferred_element_type=jnp.float32)
    for t in range(1, tt):
        part = part + jnp.dot(hb[t * tb:(t + 1) * tb, :],
                              wf1_ref[t * 256:(t + 1) * 256, :],
                              preferred_element_type=jnp.float32)
    acc_ref[...] += part                             # (tb, 256) f32 accumulator

    @pl.when(k == pl.num_programs(1) - 1)
    def _finalize():
        y = jnp.maximum(acc_ref[...] + c3_ref[...], 0.0)   # fc1 bias + bn3 + relu
        # dropout1: identity (inference)
        y = jnp.dot(y.astype(jnp.bfloat16), wf2_ref[...],
                    preferred_element_type=jnp.float32)
        y = jnp.maximum(y + c4_ref[...], 0.0)              # fc2 bias + bn4 + relu
        # dropout2: identity (inference)
        y = jnp.dot(y.astype(jnp.bfloat16), wf3_ref[...],
                    preferred_element_type=jnp.float32)
        y = jnp.maximum(y + c5_ref[...], 0.0)              # fc3 bias + bn5 + relu
        y = jnp.dot(y.astype(jnp.bfloat16), wf4_ref[...],
                    preferred_element_type=jnp.float32)
        o_ref[...] = y + b4_ref[...]                       # lane-dense padded out


# ----------------------------------------------------------------------------
# Tiling helpers.
# ----------------------------------------------------------------------------
def _pick_batch_tile(b, cap):
    # Largest tile <= cap that divides b and is a multiple of 8 (or the full b).
    for t in range(min(b, cap), 0, -1):
        if b % t == 0 and (t % 8 == 0 or t == b):
            return t
    return b


def _largest_divisor(n, cap):
    for t in range(min(n, cap), 0, -1):
        if n % t == 0:
            return t
    return n


# ----------------------------------------------------------------------------
# Parameters: raw PyTorch-shaped params, then folded for the kernel
# (BN scale into weight columns, bias+BN shift into one row, bf16 weights,
#  fc1 rows permuted, fc4 padded to a lane-dense width).
# ----------------------------------------------------------------------------
def init_raw_params(key, steps, features, outputs):
    ks = iter(jax.random.split(key, 32))
    p = {}

    def lin(o, i):
        return (0.1 * jax.random.normal(next(ks), (o, i), jnp.float32),
                0.1 * jax.random.normal(next(ks), (o,), jnp.float32))

    def bn(c):
        return (1.0 + 0.1 * jax.random.normal(next(ks), (c,), jnp.float32),    # gamma
                0.1 * jax.random.normal(next(ks), (c,), jnp.float32),           # beta
                0.1 * jax.random.normal(next(ks), (c,), jnp.float32),           # running_mean
                0.5 + jnp.abs(jax.random.normal(next(ks), (c,), jnp.float32)))  # running_var

    p["conv1_w"], p["conv1_b"] = lin(64, features)
    p["bn1"] = bn(64)
    p["conv2_w"], p["conv2_b"] = lin(256, 64)
    p["bn2"] = bn(256)
    p["fc1_w"], p["fc1_b"] = lin(256, 256 * steps)
    p["bn3"] = bn(256)
    p["fc2_w"], p["fc2_b"] = lin(256, 256)
    p["bn4"] = bn(256)
    p["fc3_w"], p["fc3_b"] = lin(64, 256)
    p["bn5"] = bn(64)
    p["fc4_w"], p["fc4_b"] = lin(outputs, 64)
    return p


def to_kernel_params(raw, steps, outputs):
    def scale_shift(bn, bias):
        g, b, m, v = bn
        s = g / jnp.sqrt(v + EPS)
        return s, (bias * s + b - m * s).reshape(1, -1).astype(jnp.float32)

    s1, c1 = scale_shift(raw["bn1"], raw["conv1_b"])
    s2, c2 = scale_shift(raw["bn2"], raw["conv2_b"])
    s3, c3 = scale_shift(raw["bn3"], raw["fc1_b"])
    s4, c4 = scale_shift(raw["bn4"], raw["fc2_b"])
    s5, c5 = scale_shift(raw["bn5"], raw["fc3_b"])

    kp = {}
    # conv1 stays f32: it is evaluated on the VPU (v5e VPU has no bf16) and tiny.
    kp["a1"] = (raw["conv1_w"].T * s1[None, :]).astype(jnp.float32)   # (F, 64)
    kp["c1"] = c1
    kp["a2"] = (raw["conv2_w"].T * s2[None, :]).astype(jnp.bfloat16)  # (64, 256)
    kp["c2"] = c2
    # fc1: permute rows from PyTorch flatten order (c*L + t) to kernel order
    # (t*256 + c), fold bn3 scale into columns.
    w = raw["fc1_w"].T.reshape(256, steps, 256)                       # [c, t, j]
    w = jnp.transpose(w, (1, 0, 2)).reshape(steps * 256, 256)         # [t*256+c, j]
    kp["wf1"] = (w * s3[None, :]).astype(jnp.bfloat16)
    kp["c3"] = c3
    kp["wf2"] = (raw["fc2_w"].T * s4[None, :]).astype(jnp.bfloat16)   # (256, 256)
    kp["c4"] = c4
    kp["wf3"] = (raw["fc3_w"].T * s5[None, :]).astype(jnp.bfloat16)   # (256, 64)
    kp["c5"] = c5
    # fc4 padded to a lane-dense 128-wide output (sliced back in JAX).
    out_pad = max(128, ((outputs + 127) // 128) * 128)
    w4 = jnp.zeros((64, out_pad), jnp.float32).at[:, :outputs].set(raw["fc4_w"].T)
    b4 = jnp.zeros((1, out_pad), jnp.float32).at[0, :outputs].set(raw["fc4_b"])
    kp["wf4"] = w4.astype(jnp.bfloat16)
    kp["b4"] = b4
    kp["n_out"] = outputs
    return kp


# ----------------------------------------------------------------------------
# Wrapper: one fused pallas_call; only the tiny input transpose and the final
# output slice run as plain JAX ops.
# ----------------------------------------------------------------------------
def cnn_model_bn_forward(x, kp, *, max_tile_b=128, max_tile_t=16):
    B, F, L = x.shape
    out_pad = kp["wf4"].shape[1]
    TB = _pick_batch_tile(B, max_tile_b)
    TT = _largest_divisor(L, max_tile_t)
    nb, nk = B // TB, L // TT

    # Time-major / channels-last input slab (tiny: B*L*F elements).
    x_tm = jnp.transpose(x, (2, 0, 1))                # (L, B, F)

    grid_spec = pltpu.PrefetchScalarGridSpec(
        num_scalar_prefetch=0,
        grid=(nb, nk),
        in_specs=[
            pl.BlockSpec((TT, TB, F), lambda i, k: (k, i, 0)),       # x block
            pl.BlockSpec((F, 64), lambda i, k: (0, 0)),              # a1 (resident)
            pl.BlockSpec((1, 64), lambda i, k: (0, 0)),              # c1
            pl.BlockSpec((64, 256), lambda i, k: (0, 0)),            # a2
            pl.BlockSpec((1, 256), lambda i, k: (0, 0)),             # c2
            pl.BlockSpec((TT * 256, 256), lambda i, k: (k, 0)),      # wf1 (streamed)
            pl.BlockSpec((1, 256), lambda i, k: (0, 0)),             # c3
            pl.BlockSpec((256, 256), lambda i, k: (0, 0)),           # wf2
            pl.BlockSpec((1, 256), lambda i, k: (0, 0)),             # c4
            pl.BlockSpec((256, 64), lambda i, k: (0, 0)),            # wf3
            pl.BlockSpec((1, 64), lambda i, k: (0, 0)),              # c5
            pl.BlockSpec((64, out_pad), lambda i, k: (0, 0)),        # wf4 (padded)
            pl.BlockSpec((1, out_pad), lambda i, k: (0, 0)),         # b4 (padded)
        ],
        out_specs=pl.BlockSpec((TB, out_pad), lambda i, k: (i, 0)),
        scratch_shapes=[pltpu.VMEM((TB, 256), jnp.float32)],          # fc1 acc
    )

    flops = int(2 * B * L * (F * 64 + 64 * 256)
                + 2 * B * (256 * L * 256 + 256 * 256 + 256 * 64 + 64 * out_pad))
    bytes_accessed = int(
        x_tm.size * 4 + kp["a1"].size * 4 + kp["a2"].size * 2
        + kp["wf1"].size * 2 * nb + kp["wf2"].size * 2 + kp["wf3"].size * 2
        + kp["wf4"].size * 2 + B * out_pad * 4
        + 4 * (64 + 256 + 256 + 256 + 64 + out_pad))

    out_full = pl.pallas_call(
        cnn_bn_fused_kernel,
        out_shape=jax.ShapeDtypeStruct((B, out_pad), jnp.float32),
        grid_spec=grid_spec,
        compiler_params=pltpu.CompilerParams(
            dimension_semantics=("parallel", "arbitrary"),
            vmem_limit_bytes=32 * 1024 * 1024),
        cost_estimate=pl.CostEstimate(
            flops=flops, transcendentals=0, bytes_accessed=bytes_accessed),
    )(x_tm, kp["a1"], kp["c1"], kp["a2"], kp["c2"],
      kp["wf1"], kp["c3"], kp["wf2"], kp["c4"],
      kp["wf3"], kp["c5"], kp["wf4"], kp["b4"])

    return out_full[:, :kp["n_out"]]


# ----------------------------------------------------------------------------
# Pure-JAX f32 reference with exact PyTorch (NCW) semantics.
# ----------------------------------------------------------------------------
def reference_forward(x, raw):
    def bn_ncw(y, bn):
        g, b, m, v = bn
        return (y - m[None, :, None]) / jnp.sqrt(v[None, :, None] + EPS) \
            * g[None, :, None] + b[None, :, None]

    def bn_nc(y, bn):
        g, b, m, v = bn
        return (y - m[None, :]) / jnp.sqrt(v[None, :] + EPS) * g[None, :] + b[None, :]

    relu = lambda a: jnp.maximum(a, 0.0)

    y = jnp.einsum("oc,bcl->bol", raw["conv1_w"], x) + raw["conv1_b"][None, :, None]
    y = relu(bn_ncw(y, raw["bn1"]))
    y = jnp.einsum("oc,bcl->bol", raw["conv2_w"], y) + raw["conv2_b"][None, :, None]
    y = relu(bn_ncw(y, raw["bn2"]))
    y = y.reshape(y.shape[0], -1)                      # torch.flatten: (B, 256*steps)
    y = relu(bn_nc(y @ raw["fc1_w"].T + raw["fc1_b"], raw["bn3"]))
    y = relu(bn_nc(y @ raw["fc2_w"].T + raw["fc2_b"], raw["bn4"]))
    y = relu(bn_nc(y @ raw["fc3_w"].T + raw["fc3_b"], raw["bn5"]))
    y = y @ raw["fc4_w"].T + raw["fc4_b"]
    return y


if __name__ == "__main__":
    batch, features, steps, outputs = 16, 4, 16, 3

    key = jax.random.PRNGKey(0)
    k_x, k_p = jax.random.split(key)
    x = jax.random.normal(k_x, (batch, features, steps), jnp.float32)

    raw = init_raw_params(k_p, steps, features, outputs)
    kp = to_kernel_params(raw, steps, outputs)

    # Small tiles so the demo exercises both grid axes: grid = (2 batch tiles,
    # 2 time/K blocks) -> accumulator init/finalize and weight streaming run.
    out = cnn_model_bn_forward(x, kp, max_tile_b=8, max_tile_t=8)
    out = jax.block_until_ready(out)

    ref = reference_forward(x, raw)
    assert out.shape == (batch, outputs), out.shape
    # Tolerance sized for bf16 weight/activation quantization (f32 accumulation);
    # typical max abs deviation from the f32 reference is ~1e-2.
    max_diff = jnp.max(jnp.abs(out - ref))
    assert jnp.allclose(out, ref, atol=1e-1, rtol=1e-1), \
        f"max abs diff = {max_diff}"

    print("KERNEL_OK")
</pallas_src>

<mosaic_0001>
module attributes {stable_mosaic.version = 11 : i64} {
  func.func @cnn_bn_fused_kernel(%arg0: i32, %arg1: i32, %arg2: memref<8x8x4xf32, #tpu.memory_space<vmem>>, %arg3: memref<4x64xf32, #tpu.memory_space<vmem>>, %arg4: memref<1x64xf32, #tpu.memory_space<vmem>>, %arg5: memref<64x256xbf16, #tpu.memory_space<vmem>>, %arg6: memref<1x256xf32, #tpu.memory_space<vmem>>, %arg7: memref<2048x256xbf16, #tpu.memory_space<vmem>>, %arg8: memref<1x256xf32, #tpu.memory_space<vmem>>, %arg9: memref<256x256xbf16, #tpu.memory_space<vmem>>, %arg10: memref<1x256xf32, #tpu.memory_space<vmem>>, %arg11: memref<256x64xbf16, #tpu.memory_space<vmem>>, %arg12: memref<1x64xf32, #tpu.memory_space<vmem>>, %arg13: memref<64x128xbf16, #tpu.memory_space<vmem>>, %arg14: memref<1x128xf32, #tpu.memory_space<vmem>>, %arg15: memref<8x128xf32, #tpu.memory_space<vmem>>, %arg16: memref<8x256xf32, #tpu.memory_space<vmem>>) attributes {dimension_semantics = [#tpu.dimension_semantics<parallel>, #tpu.dimension_semantics<arbitrary>], iteration_bounds = array<i64: 2, 2>, scalar_prefetch = 0 : i64, scratch_operands = 1 : i64, tpu.core_type = #tpu.core_type<tc>, window_params = [{transform_indices = @transform_0, window_bounds = array<i64: 8, 8, 4>}, {pipeline_mode = #tpu.pipeline_mode<synchronous>, transform_indices = @transform_1, window_bounds = array<i64: 4, 64>}, {pipeline_mode = #tpu.pipeline_mode<synchronous>, transform_indices = @transform_2, window_bounds = array<i64: 1, 64>}, {pipeline_mode = #tpu.pipeline_mode<synchronous>, transform_indices = @transform_3, window_bounds = array<i64: 64, 256>}, {pipeline_mode = #tpu.pipeline_mode<synchronous>, transform_indices = @transform_4, window_bounds = array<i64: 1, 256>}, {transform_indices = @transform_5, window_bounds = array<i64: 2048, 256>}, {pipeline_mode = #tpu.pipeline_mode<synchronous>, transform_indices = @transform_6, window_bounds = array<i64: 1, 256>}, {pipeline_mode = #tpu.pipeline_mode<synchronous>, transform_indices = @transform_7, window_bounds = array<i64: 256, 256>}, {pipeline_mode = #tpu.pipeline_mode<synchronous>, transform_indices = @transform_8, window_bounds = array<i64: 1, 256>}, {pipeline_mode = #tpu.pipeline_mode<synchronous>, transform_indices = @transform_9, window_bounds = array<i64: 256, 64>}, {pipeline_mode = #tpu.pipeline_mode<synchronous>, transform_indices = @transform_10, window_bounds = array<i64: 1, 64>}, {pipeline_mode = #tpu.pipeline_mode<synchronous>, transform_indices = @transform_11, window_bounds = array<i64: 64, 128>}, {pipeline_mode = #tpu.pipeline_mode<synchronous>, transform_indices = @transform_12, window_bounds = array<i64: 1, 128>}, {transform_indices = @transform_13, window_bounds = array<i64: 8, 128>}]} {
    %c0_i32 = arith.constant 0 : i32
    %0 = arith.cmpi eq, %arg1, %c0_i32 : i32
    %1 = arith.extui %0 : i1 to i32
    %c0_i32_0 = arith.constant 0 : i32
    %2 = arith.cmpi ne, %1, %c0_i32_0 : i32
    scf.if %2 {
      %cst_38 = arith.constant 0.000000e+00 : f32
      %79 = vector.broadcast %cst_38 : f32 to vector<8x256xf32>
      %c0_39 = arith.constant 0 : index
      %c0_40 = arith.constant 0 : index
      %80 = vector.load %arg16[%c0_39, %c0_40] : memref<8x256xf32, #tpu.memory_space<vmem>>, vector<8x256xf32>
      tpu.vector_store %arg16[%c0_39, %c0_40], %79 {strides = array<i32>} : memref<8x256xf32, #tpu.memory_space<vmem>>, vector<8x256xf32>,
    } else {
    }
    %c0 = arith.constant 0 : index
    %c0_1 = arith.constant 0 : index
    %c0_2 = arith.constant 0 : index
    %3 = vector.load %arg2[%c0, %c0_1, %c0_2] : memref<8x8x4xf32, #tpu.memory_space<vmem>>, vector<8x8x4xf32>
    %4 = vector.shape_cast %3 : vector<8x8x4xf32> to vector<64x4xf32>
    %5 = vector.extract_strided_slice %4 {offsets = [0, 0], sizes = [64, 1], strides = [1, 1]} : vector<64x4xf32> to vector<64x1xf32>
    %c0_3 = arith.constant 0 : index
    %c0_4 = arith.constant 0 : index
    %6 = vector.load %arg3[%c0_3, %c0_4] : memref<4x64xf32, #tpu.memory_space<vmem>>, vector<1x64xf32>
    %7 = vector.broadcast %5 : vector<64x1xf32> to vector<64x64xf32>
    %8 = vector.broadcast %6 : vector<1x64xf32> to vector<64x64xf32>
    %9 = arith.mulf %7, %8 : vector<64x64xf32>
    %10 = vector.extract_strided_slice %4 {offsets = [0, 1], sizes = [64, 1], strides = [1, 1]} : vector<64x4xf32> to vector<64x1xf32>
    %c1 = arith.constant 1 : index
    %c0_5 = arith.constant 0 : index
    %11 = vector.load %arg3[%c1, %c0_5] : memref<4x64xf32, #tpu.memory_space<vmem>>, vector<1x64xf32>
    %12 = vector.broadcast %10 : vector<64x1xf32> to vector<64x64xf32>
    %13 = vector.broadcast %11 : vector<1x64xf32> to vector<64x64xf32>
    %14 = arith.mulf %12, %13 : vector<64x64xf32>
    %15 = arith.addf %9, %14 : vector<64x64xf32>
    %16 = vector.extract_strided_slice %4 {offsets = [0, 2], sizes = [64, 1], strides = [1, 1]} : vector<64x4xf32> to vector<64x1xf32>
    %c2 = arith.constant 2 : index
    %c0_6 = arith.constant 0 : index
    %17 = vector.load %arg3[%c2, %c0_6] : memref<4x64xf32, #tpu.memory_space<vmem>>, vector<1x64xf32>
    %18 = vector.broadcast %16 : vector<64x1xf32> to vector<64x64xf32>
    %19 = vector.broadcast %17 : vector<1x64xf32> to vector<64x64xf32>
    %20 = arith.mulf %18, %19 : vector<64x64xf32>
    %21 = arith.addf %15, %20 : vector<64x64xf32>
    %22 = vector.extract_strided_slice %4 {offsets = [0, 3], sizes = [64, 1], strides = [1, 1]} : vector<64x4xf32> to vector<64x1xf32>
    %c3 = arith.constant 3 : index
    %c0_7 = arith.constant 0 : index
    %23 = vector.load %arg3[%c3, %c0_7] : memref<4x64xf32, #tpu.memory_space<vmem>>, vector<1x64xf32>
    %24 = vector.broadcast %22 : vector<64x1xf32> to vector<64x64xf32>
    %25 = vector.broadcast %23 : vector<1x64xf32> to vector<64x64xf32>
    %26 = arith.mulf %24, %25 : vector<64x64xf32>
    %27 = arith.addf %21, %26 : vector<64x64xf32>
    %c0_8 = arith.constant 0 : index
    %c0_9 = arith.constant 0 : index
    %28 = vector.load %arg4[%c0_8, %c0_9] : memref<1x64xf32, #tpu.memory_space<vmem>>, vector<1x64xf32>
    %29 = vector.broadcast %28 : vector<1x64xf32> to vector<64x64xf32>
    %30 = arith.addf %27, %29 : vector<64x64xf32>
    %cst = arith.constant 0.000000e+00 : f32
    %31 = vector.broadcast %cst : f32 to vector<64x64xf32>
    %32 = arith.maximumf %30, %31 : vector<64x64xf32>
    %33 = arith.truncf %32 : vector<64x64xf32> to vector<64x64xbf16>
    %c0_10 = arith.constant 0 : index
    %c0_11 = arith.constant 0 : index
    %34 = vector.load %arg5[%c0_10, %c0_11] : memref<64x256xbf16, #tpu.memory_space<vmem>>, vector<64x256xbf16>
    %cst_12 = arith.constant dense<0.000000e+00> : vector<64x256xf32>
    %35 = tpu.matmul %33, %34, %cst_12 {dimension_numbers = #tpu.dot_dimension_numbers<[1], [0], [0], [1], [0, 0, 1, 1], [], []>} : vector<64x64xbf16>, vector<64x256xbf16>, vector<64x256xf32> -> vector<64x256xf32>
    %c0_13 = arith.constant 0 : index
    %c0_14 = arith.constant 0 : index
    %36 = vector.load %arg6[%c0_13, %c0_14] : memref<1x256xf32, #tpu.memory_space<vmem>>, vector<1x256xf32>
    %37 = vector.broadcast %36 : vector<1x256xf32> to vector<64x256xf32>
    %38 = arith.addf %35, %37 : vector<64x256xf32>
    %cst_15 = arith.constant 0.000000e+00 : f32
    %39 = vector.broadcast %cst_15 : f32 to vector<64x256xf32>
    %40 = arith.maximumf %38, %39 : vector<64x256xf32>
    %41 = arith.truncf %40 : vector<64x256xf32> to vector<64x256xbf16>
    %42 = vector.extract_strided_slice %41 {offsets = [0, 0], sizes = [8, 256], strides = [1, 1]} : vector<64x256xbf16> to vector<8x256xbf16>
    %c0_16 = arith.constant 0 : index
    %c0_17 = arith.constant 0 : index
    %43 = vector.load %arg7[%c0_16, %c0_17] : memref<2048x256xbf16, #tpu.memory_space<vmem>>, vector<256x256xbf16>
    %cst_18 = arith.constant dense<0.000000e+00> : vector<8x256xf32>
    %44 = tpu.matmul %42, %43, %cst_18 {dimension_numbers = #tpu.dot_dimension_numbers<[1], [0], [0], [1], [0, 0, 1, 1], [], []>} : vector<8x256xbf16>, vector<256x256xbf16>, vector<8x256xf32> -> vector<8x256xf32>
    %45 = vector.extract_strided_slice %41 {offsets = [8, 0], sizes = [8, 256], strides = [1, 1]} : vector<64x256xbf16> to vector<8x256xbf16>
    %c256 = arith.constant 256 : index
    %c0_19 = arith.constant 0 : index
    %46 = vector.load %arg7[%c256, %c0_19] : memref<2048x256xbf16, #tpu.memory_space<vmem>>, vector<256x256xbf16>
    %cst_20 = arith.constant dense<0.000000e+00> : vector<8x256xf32>
    %47 = tpu.matmul %45, %46, %cst_20 {dimension_numbers = #tpu.dot_dimension_numbers<[1], [0], [0], [1], [0, 0, 1, 1], [], []>} : vector<8x256xbf16>, vector<256x256xbf16>, vector<8x256xf32> -> vector<8x256xf32>
    %48 = arith.addf %44, %47 : vector<8x256xf32>
    %49 = vector.extract_strided_slice %41 {offsets = [16, 0], sizes = [8, 256], strides = [1, 1]} : vector<64x256xbf16> to vector<8x256xbf16>
    %c512 = arith.constant 512 : index
    %c0_21 = arith.constant 0 : index
    %50 = vector.load %arg7[%c512, %c0_21] : memref<2048x256xbf16, #tpu.memory_space<vmem>>, vector<256x256xbf16>
    %cst_22 = arith.constant dense<0.000000e+00> : vector<8x256xf32>
    %51 = tpu.matmul %49, %50, %cst_22 {dimension_numbers = #tpu.dot_dimension_numbers<[1], [0], [0], [1], [0, 0, 1, 1], [], []>} : vector<8x256xbf16>, vector<256x256xbf16>, vector<8x256xf32> -> vector<8x256xf32>
    %52 = arith.addf %48, %51 : vector<8x256xf32>
    %53 = vector.extract_strided_slice %41 {offsets = [24, 0], sizes = [8, 256], strides = [1, 1]} : vector<64x256xbf16> to vector<8x256xbf16>
    %c768 = arith.constant 768 : index
    %c0_23 = arith.constant 0 : index
    %54 = vector.load %arg7[%c768, %c0_23] : memref<2048x256xbf16, #tpu.memory_space<vmem>>, vector<256x256xbf16>
    %cst_24 = arith.constant dense<0.000000e+00> : vector<8x256xf32>
    %55 = tpu.matmul %53, %54, %cst_24 {dimension_numbers = #tpu.dot_dimension_numbers<[1], [0], [0], [1], [0, 0, 1, 1], [], []>} : vector<8x256xbf16>, vector<256x256xbf16>, vector<8x256xf32> -> vector<8x256xf32>
    %56 = arith.addf %52, %55 : vector<8x256xf32>
    %57 = vector.extract_strided_slice %41 {offsets = [32, 0], sizes = [8, 256], strides = [1, 1]} : vector<64x256xbf16> to vector<8x256xbf16>
    %c1024 = arith.constant 1024 : index
    %c0_25 = arith.constant 0 : index
    %58 = vector.load %arg7[%c1024, %c0_25] : memref<2048x256xbf16, #tpu.memory_space<vmem>>, vector<256x256xbf16>
    %cst_26 = arith.constant dense<0.000000e+00> : vector<8x256xf32>
    %59 = tpu.matmul %57, %58, %cst_26 {dimension_numbers = #tpu.dot_dimension_numbers<[1], [0], [0], [1], [0, 0, 1, 1], [], []>} : vector<8x256xbf16>, vector<256x256xbf16>, vector<8x256xf32> -> vector<8x256xf32>
    %60 = arith.addf %56, %59 : vector<8x256xf32>
    %61 = vector.extract_strided_slice %41 {offsets = [40, 0], sizes = [8, 256], strides = [1, 1]} : vector<64x256xbf16> to vector<8x256xbf16>
    %c1280 = arith.constant 1280 : index
    %c0_27 = arith.constant 0 : index
    %62 = vector.load %arg7[%c1280, %c0_27] : memref<2048x256xbf16, #tpu.memory_space<vmem>>, vector<256x256xbf16>
    %cst_28 = arith.constant dense<0.000000e+00> : vector<8x256xf32>
    %63 = tpu.matmul %61, %62, %cst_28 {dimension_numbers = #tpu.dot_dimension_numbers<[1], [0], [0], [1], [0, 0, 1, 1], [], []>} : vector<8x256xbf16>, vector<256x256xbf16>, vector<8x256xf32> -> vector<8x256xf32>
    %64 = arith.addf %60, %63 : vector<8x256xf32>
    %65 = vector.extract_strided_slice %41 {offsets = [48, 0], sizes = [8, 256], strides = [1, 1]} : vector<64x256xbf16> to vector<8x256xbf16>
    %c1536 = arith.constant 1536 : index
    %c0_29 = arith.constant 0 : index
    %66 = vector.load %arg7[%c1536, %c0_29] : memref<2048x256xbf16, #tpu.memory_space<vmem>>, vector<256x256xbf16>
    %cst_30 = arith.constant dense<0.000000e+00> : vector<8x256xf32>
    %67 = tpu.matmul %65, %66, %cst_30 {dimension_numbers = #tpu.dot_dimension_numbers<[1], [0], [0], [1], [0, 0, 1, 1], [], []>} : vector<8x256xbf16>, vector<256x256xbf16>, vector<8x256xf32> -> vector<8x256xf32>
    %68 = arith.addf %64, %67 : vector<8x256xf32>
    %69 = vector.extract_strided_slice %41 {offsets = [56, 0], sizes = [8, 256], strides = [1, 1]} : vector<64x256xbf16> to vector<8x256xbf16>
    %c1792 = arith.constant 1792 : index
    %c0_31 = arith.constant 0 : index
    %70 = vector.load %arg7[%c1792, %c0_31] : memref<2048x256xbf16, #tpu.memory_space<vmem>>, vector<256x256xbf16>
    %cst_32 = arith.constant dense<0.000000e+00> : vector<8x256xf32>
    %71 = tpu.matmul %69, %70, %cst_32 {dimension_numbers = #tpu.dot_dimension_numbers<[1], [0], [0], [1], [0, 0, 1, 1], [], []>} : vector<8x256xbf16>, vector<256x256xbf16>, vector<8x256xf32> -> vector<8x256xf32>
    %72 = arith.addf %68, %71 : vector<8x256xf32>
    %c0_33 = arith.constant 0 : index
    %c0_34 = arith.constant 0 : index
    %73 = vector.load %arg16[%c0_33, %c0_34] : memref<8x256xf32, #tpu.memory_space<vmem>>, vector<8x256xf32>
    %74 = arith.addf %73, %72 : vector<8x256xf32>
    %c0_35 = arith.constant 0 : index
    %c0_36 = arith.constant 0 : index
    %75 = vector.load %arg16[%c0_35, %c0_36] : memref<8x256xf32, #tpu.memory_space<vmem>>, vector<8x256xf32>
    tpu.vector_store %arg16[%c0_35, %c0_36], %74 {strides = array<i32>} : memref<8x256xf32, #tpu.memory_space<vmem>>, vector<8x256xf32>,
    %c1_i32 = arith.constant 1 : i32
    %76 = arith.cmpi eq, %arg1, %c1_i32 : i32
    %77 = arith.extui %76 : i1 to i32
    %c0_i32_37 = arith.constant 0 : i32
    %78 = arith.cmpi ne, %77, %c0_i32_37 : i32
    scf.if %78 {
      %c0_38 = arith.constant 0 : index
      %c0_39 = arith.constant 0 : index
      %79 = vector.load %arg16[%c0_38, %c0_39] : memref<8x256xf32, #tpu.memory_space<vmem>>, vector<8x256xf32>
      %c0_40 = arith.constant 0 : index
      %c0_41 = arith.constant 0 : index
      %80 = vector.load %arg8[%c0_40, %c0_41] : memref<1x256xf32, #tpu.memory_space<vmem>>, vector<1x256xf32>
      %81 = vector.broadcast %80 : vector<1x256xf32> to vector<8x256xf32>
      %82 = arith.addf %79, %81 : vector<8x256xf32>
      %cst_42 = arith.constant 0.000000e+00 : f32
      %83 = vector.broadcast %cst_42 : f32 to vector<8x256xf32>
      %84 = arith.maximumf %82, %83 : vector<8x256xf32>
      %85 = arith.truncf %84 : vector<8x256xf32> to vector<8x256xbf16>
      %c0_43 = arith.constant 0 : index
      %c0_44 = arith.constant 0 : index
      %86 = vector.load %arg9[%c0_43, %c0_44] : memref<256x256xbf16, #tpu.memory_space<vmem>>, vector<256x256xbf16>
      %cst_45 = arith.constant dense<0.000000e+00> : vector<8x256xf32>
      %87 = tpu.matmul %85, %86, %cst_45 {dimension_numbers = #tpu.dot_dimension_numbers<[1], [0], [0], [1], [0, 0, 1, 1], [], []>} : vector<8x256xbf16>, vector<256x256xbf16>, vector<8x256xf32> -> vector<8x256xf32>
      %c0_46 = arith.constant 0 : index
      %c0_47 = arith.constant 0 : index
      %88 = vector.load %arg10[%c0_46, %c0_47] : memref<1x256xf32, #tpu.memory_space<vmem>>, vector<1x256xf32>
      %89 = vector.broadcast %88 : vector<1x256xf32> to vector<8x256xf32>
      %90 = arith.addf %87, %89 : vector<8x256xf32>
      %cst_48 = arith.constant 0.000000e+00 : f32
      %91 = vector.broadcast %cst_48 : f32 to vector<8x256xf32>
      %92 = arith.maximumf %90, %91 : vector<8x256xf32>
      %93 = arith.truncf %92 : vector<8x256xf32> to vector<8x256xbf16>
      %c0_49 = arith.constant 0 : index
      %c0_50 = arith.constant 0 : index
      %94 = vector.load %arg11[%c0_49, %c0_50] : memref<256x64xbf16, #tpu.memory_space<vmem>>, vector<256x64xbf16>
      %cst_51 = arith.constant dense<0.000000e+00> : vector<8x64xf32>
      %95 = tpu.matmul %93, %94, %cst_51 {dimension_numbers = #tpu.dot_dimension_numbers<[1], [0], [0], [1], [0, 0, 1, 1], [], []>} : vector<8x256xbf16>, vector<256x64xbf16>, vector<8x64xf32> -> vector<8x64xf32>
      %c0_52 = arith.constant 0 : index
      %c0_53 = arith.constant 0 : index
      %96 = vector.load %arg12[%c0_52, %c0_53] : memref<1x64xf32, #tpu.memory_space<vmem>>, vector<1x64xf32>
      %97 = vector.broadcast %96 : vector<1x64xf32> to vector<8x64xf32>
      %98 = arith.addf %95, %97 : vector<8x64xf32>
      %cst_54 = arith.constant 0.000000e+00 : f32
      %99 = vector.broadcast %cst_54 : f32 to vector<8x64xf32>
      %100 = arith.maximumf %98, %99 : vector<8x64xf32>
      %101 = arith.truncf %100 : vector<8x64xf32> to vector<8x64xbf16>
      %c0_55 = arith.constant 0 : index
      %c0_56 = arith.constant 0 : index
      %102 = vector.load %arg13[%c0_55, %c0_56] : memref<64x128xbf16, #tpu.memory_space<vmem>>, vector<64x128xbf16>
      %cst_57 = arith.constant dense<0.000000e+00> : vector<8x128xf32>
      %103 = tpu.matmul %101, %102, %cst_57 {dimension_numbers = #tpu.dot_dimension_numbers<[1], [0], [0], [1], [0, 0, 1, 1], [], []>} : vector<8x64xbf16>, vector<64x128xbf16>, vector<8x128xf32> -> vector<8x128xf32>
      %c0_58 = arith.constant 0 : index
      %c0_59 = arith.constant 0 : index
      %104 = vector.load %arg14[%c0_58, %c0_59] : memref<1x128xf32, #tpu.memory_space<vmem>>, vector<1x128xf32>
      %105 = vector.broadcast %104 : vector<1x128xf32> to vector<8x128xf32>
      %106 = arith.addf %103, %105 : vector<8x128xf32>
      %c0_60 = arith.constant 0 : index
      %c0_61 = arith.constant 0 : index
      %107 = vector.load %arg15[%c0_60, %c0_61] : memref<8x128xf32, #tpu.memory_space<vmem>>, vector<8x128xf32>
      tpu.vector_store %arg15[%c0_60, %c0_61], %106 {strides = array<i32>} : memref<8x128xf32, #tpu.memory_space<vmem>>, vector<8x128xf32>,
    } else {
    }
    return
  }
  func.func @transform_0(%arg0: i32, %arg1: i32) -> (i32, i32, i32) {
    %c0_i32 = arith.constant 0 : i32
    %c0_i32_0 = arith.constant 0 : i32
    return %arg1, %arg0, %c0_i32 : i32, i32, i32
  }
  func.func @transform_1(%arg0: i32, %arg1: i32) -> (i32, i32) {
    %c0_i32 = arith.constant 0 : i32
    %c0_i32_0 = arith.constant 0 : i32
    %c0_i32_1 = arith.constant 0 : i32
    return %c0_i32, %c0_i32_0 : i32, i32
  }
  func.func @transform_2(%arg0: i32, %arg1: i32) -> (i32, i32) {
    %c0_i32 = arith.constant 0 : i32
    %c0_i32_0 = arith.constant 0 : i32
    %c0_i32_1 = arith.constant 0 : i32
    return %c0_i32, %c0_i32_0 : i32, i32
  }
  func.func @transform_3(%arg0: i32, %arg1: i32) -> (i32, i32) {
    %c0_i32 = arith.constant 0 : i32
    %c0_i32_0 = arith.constant 0 : i32
    %c0_i32_1 = arith.constant 0 : i32
    return %c0_i32, %c0_i32_0 : i32, i32
  }
  func.func @transform_4(%arg0: i32, %arg1: i32) -> (i32, i32) {
    %c0_i32 = arith.constant 0 : i32
    %c0_i32_0 = arith.constant 0 : i32
    %c0_i32_1 = arith.constant 0 : i32
    return %c0_i32, %c0_i32_0 : i32, i32
  }
  func.func @transform_5(%arg0: i32, %arg1: i32) -> (i32, i32) {
    %c0_i32 = arith.constant 0 : i32
    %c0_i32_0 = arith.constant 0 : i32
    return %arg1, %c0_i32 : i32, i32
  }
  func.func @transform_6(%arg0: i32, %arg1: i32) -> (i32, i32) {
    %c0_i32 = arith.constant 0 : i32
    %c0_i32_0 = arith.constant 0 : i32
    %c0_i32_1 = arith.constant 0 : i32
    return %c0_i32, %c0_i32_0 : i32, i32
  }
  func.func @transform_7(%arg0: i32, %arg1: i32) -> (i32, i32) {
    %c0_i32 = arith.constant 0 : i32
    %c0_i32_0 = arith.constant 0 : i32
    %c0_i32_1 = arith.constant 0 : i32
    return %c0_i32, %c0_i32_0 : i32, i32
  }
  func.func @transform_8(%arg0: i32, %arg1: i32) -> (i32, i32) {
    %c0_i32 = arith.constant 0 : i32
    %c0_i32_0 = arith.constant 0 : i32
    %c0_i32_1 = arith.constant 0 : i32
    return %c0_i32, %c0_i32_0 : i32, i32
  }
  func.func @transform_9(%arg0: i32, %arg1: i32) -> (i32, i32) {
    %c0_i32 = arith.constant 0 : i32
    %c0_i32_0 = arith.constant 0 : i32
    %c0_i32_1 = arith.constant 0 : i32
    return %c0_i32, %c0_i32_0 : i32, i32
  }
  func.func @transform_10(%arg0: i32, %arg1: i32) -> (i32, i32) {
    %c0_i32 = arith.constant 0 : i32
    %c0_i32_0 = arith.constant 0 : i32
    %c0_i32_1 = arith.constant 0 : i32
    return %c0_i32, %c0_i32_0 : i32, i32
  }
  func.func @transform_11(%arg0: i32, %arg1: i32) -> (i32, i32) {
    %c0_i32 = arith.constant 0 : i32
    %c0_i32_0 = arith.constant 0 : i32
    %c0_i32_1 = arith.constant 0 : i32
    return %c0_i32, %c0_i32_0 : i32, i32
  }
  func.func @transform_12(%arg0: i32, %arg1: i32) -> (i32, i32) {
    %c0_i32 = arith.constant 0 : i32
    %c0_i32_0 = arith.constant 0 : i32
    %c0_i32_1 = arith.constant 0 : i32
    return %c0_i32, %c0_i32_0 : i32, i32
  }
  func.func @transform_13(%arg0: i32, %arg1: i32) -> (i32, i32) {
    %c0_i32 = arith.constant 0 : i32
    %c0_i32_0 = arith.constant 0 : i32
    return %arg0, %c0_i32 : i32, i32
  }
}

</mosaic_0001>

<bundles_post_ra>
// kernel: tpu_custom_call.1
= control target key start
LH: loop header
LB: loop body
LE: loop exit
PB: predicated region body
PF: predicated region fallthrough
CT: control target
= control target key end

     0   :  { %s6257_s0 = inlined_call_operand.vmem [shape: f32[16,16,4], index: 0, kind: input, shape index: {}]   ;;  %s6258_s1 = inlined_call_operand.hbm [shape: f32[4,64], index: 1, kind: input, shape index: {}]   ;;  %s6259_s2 = inlined_call_operand.hbm [shape: f32[1,64], index: 2, kind: input, shape index: {}]   ;;  %s6260_s3 = inlined_call_operand.hbm [shape: bf16[64,256], index: 3, kind: input, shape index: {}]   ;;  %s6261_s4 = inlined_call_operand.hbm [shape: f32[1,256], index: 4, kind: input, shape index: {}]   ;;  %s6262_s5 = inlined_call_operand.hbm [shape: bf16[4096,256], index: 5, kind: input, shape index: {}]   ;;  %s6263_s6 = inlined_call_operand.hbm [shape: f32[1,256], index: 6, kind: input, shape index: {}]   ;;  %s6264_s7 = inlined_call_operand.hbm [shape: bf16[256,256], index: 7, kind: input, shape index: {}]   ;;  %s6265_s8 = inlined_call_operand.hbm [shape: f32[1,256], index: 8, kind: input, shape index: {}]   ;;  %s6266_s9 = inlined_call_operand.vmem [shape: bf16[256,64], index: 9, kind: input, shape index: {}]   ;;  %s6267_s10 = inlined_call_operand.hbm [shape: f32[1,64], index: 10, kind: input, shape index: {}]   ;;  %s6268_s11 = inlined_call_operand.hbm [shape: bf16[64,128], index: 11, kind: input, shape index: {}]   ;;  %s6269_s12 = inlined_call_operand.hbm [shape: f32[1,128], index: 12, kind: input, shape index: {}]   ;;  %s6270_s13 = inlined_call_operand.hbm [shape: f32[16,128], index: 13, kind: output, shape index: {}]  }
   0x1   :  { %6288 = sst [smem:[#allocation44_spill]] %s6257_s0 }
   0x2   :  { %6289 = sst [smem:[#allocation45_spill]] %s6258_s1 }
   0x3   :  { %6290 = sst [smem:[#allocation46_spill]] %s6259_s2 }
   0x4   :  { %6291 = sst [smem:[#allocation47_spill]] %s6260_s3 }
   0x5   :  { %6292 = sst [smem:[#allocation48_spill]] %s6261_s4 }
   0x6   :  { %6293 = sst [smem:[#allocation49_spill]] %s6262_s5 }
   0x7   :  { %6294 = sst [smem:[#allocation50_spill]] %s6263_s6 }
   0x8   :  { %6295 = sst [smem:[#allocation51_spill]] %s6264_s7 }
   0x9   :  { %6296 = sst [smem:[#allocation52_spill]] %s6266_s9 }
   0xa   :  { %6297 = sst [smem:[#allocation53_spill]] %s6270_s13 }
   0xb   :  { %18 = vsyncpa [#allocation5], 0 }
   0xc   :  { %19 = vsyncpa [#allocation8], 0 }
   0xd   :  { %20 = vsyncpa [#allocation11], 0 }
   0xe   :  { %21 = vsyncpa [#allocation16], 0 }
   0xf   :  { %22 = vsyncpa [#allocation19], 0 }
  0x10   :  { %23 = vsyncpa [#allocation6], 0 }
  0x11   :  { %25 = vsyncpa [#allocation6 + $0x1], 0  ;;  %s5438_s25 = smov 0   ;;  %s5440_s26 = smov 0  }
  0x12   :  { %s5442_s27 = smov 0   ;;  %s5444_s28 = smov 0  }
  0x13   :  { %s5446_s29 = smov 0   ;;  %s5448_s30 = smov 0  }
  0x14   :  { %s5450_s14 = smov 0   ;;  %s5452_s15 = smov 0  }
  0x15   :  { %s5454_s16 = smov 0   ;;  %s5456_s17 = smov 0  }
  0x16   :  { %s5458_s18 = smov 0   ;;  %s5460_s19 = smov 0  }
  0x17   :  { %s5462_s20 = smov 0  }
  0x18 LB: > { %6298 = sst [smem:[#allocation31_spill]] %s5293_s25  ;;  %s5504_s21 = sadd.s32 4294967295, %s5341_s20   ;;  %s5341_s20 = sphi %s5462_s20, %s31_s20   ;;  %s5337_s19 = sphi %s5460_s19, %s6377_s19   ;;  %s5333_s18 = sphi %s5458_s18, %s6367_s18   ;;  %s5329_s17 = sphi %s5456_s17, %s6376_s17   ;;  %s5325_s16 = sphi %s5454_s16, %s6366_s16   ;;  %s5321_s15 = sphi %s5452_s15, %s6375_s15   ;;  %s5317_s14 = sphi %s5450_s14, %s6374_s14   ;;  %s5313_s30 = sphi %s5448_s30, %s6373_s30   ;;  %s5309_s29 = sphi %s5446_s29, %s6372_s29   ;;  %s5305_s28 = sphi %s5444_s28, %s6371_s28   ;;  %s5301_s27 = sphi %s5442_s27, %s6363_s27   ;;  %s5297_s26 = sphi %s5440_s26, %s6370_s26   ;;  %s5293_s25 = sphi %s5438_s25, %s6369_s25  }
  0x19   : > { %6299 = sst [smem:[#allocation32_spill]] %s5301_s27  ;;  %s40_s23 = sadd.s32 1, %s5333_s18 }
  0x1a   : > { %6300 = sst [smem:[#allocation33_spill]] %s5317_s14  ;;  %s43_s24 = sadd.s32 1, %s5337_s19 }
  0x1b   : > { %6301 = sst [smem:[#allocation34_spill]] %s5325_s16  ;;  %p41_p0 = scmp.ge.s32.totalorder %s40_s23, 2 }
  0x1c   : > { %6302 = sst [smem:[#allocation35_spill]] %s5329_s17  ;;  %s52_s13 = sadd.s32 1, %s5321_s15 }
  0x1d   : > { %6303 = sst [smem:[#allocation36_spill]] %s5333_s18  ;;  %p59_p1 = scmp.ne.s32.totalorder %s5321_s15, %s5317_s14 }
  0x1e   : > { %p60_p2 = scmp.eq.s32.totalorder %s5341_s20, 0  ;;  %s6379_s23 = smov (%p41_p0, %s40_s23), 0 }
  0x1f   : > { %6304 = sst [smem:[#allocation37_spill]] %s6379_s23  ;;  %s6381_s24 = smov (!%p41_p0, %s43_s24), %s5337_s19 }
  0x20   : > { %s47_s17 = ssub.s32 %s5333_s18, %s6379_s23  ;;  %p5518_p3 = por %p60_p2, %p59_p1 }
  0x21   : > { %p45_p4 = scmp.ge.s32.totalorder %s6381_s24, 2  ;;  %p160_p5 = scmp.eq.s32.totalorder %s47_s17, 0 }
  0x22   : > { %s6305_s22 = scalar_select %p5518_p3, 1, 0 }
  0x23   : > { %s162_s9 = sadd.s32 1, %s5313_s30  ;;  %p169_p6 = scmp.ne.s32.totalorder %s5313_s30, %s5309_s29 }
  0x24   : > { %6306 = sst [smem:[#allocation38_spill]] %s6305_s22  ;;  %s6383_s24 = smov (%p45_p4, %s6381_s24), 0 }
  0x25   : > { %6307 = sst [smem:[#allocation39_spill]] %s6383_s24  ;;  %s48_s16 = ssub.s32 %s5337_s19, %s6383_s24 }
  0x26   : > { %s5528_s23 = scalar_select %p160_p5, %s5313_s30, %s162_s9  }
  0x27   : > { %p5532_p7 = por %p169_p6, %p60_p2  ;;  %s49_s5 = sor.u32 %s48_s16, %s47_s17 }
  0x28   : > { %6308 = sst [smem:[#allocation40_spill]] %s5528_s23  ;;  %p175_p8 = scmp.ne.s32.totalorder %s5309_s29, %s5305_s28 }
  0x29   : > { %s6309_s14 = scalar_select %p5532_p7, 1, 0 }
  0x2a   : > { %p50_p9 = scmp.eq.s32.totalorder %s49_s5, 0  ;;  %p6279_p10 = scmp.eq.s32.totalorder %s5504_s21, 0 }
  0x2b   : > { %p333_p11 = scmp.eq.s32.totalorder %s48_s16, 0  ;;  %s335_s0 = sadd.s32 1, %s5301_s27 }
  0x2c   : > { %s5541_s18 = scalar_select %p50_p9, %s5321_s15, %s52_s13  }
  0x2d   : > { %p5545_p12 = por %p6279_p10, %p175_p8  ;;  %p345_p13 = scmp.ne.s32.totalorder %s5301_s27, %s5297_s26 }
  0x2e   : > { %6310 = sst [smem:[#allocation41_spill]] %s5541_s18  ;;  %p346_p0 = scmp.eq.s32.totalorder %s5504_s21, 3 }
  0x2f   : > { %s6311_s22 = scalar_select %p5545_p12, 1, 0 }
  0x30   : > { %s5552_s9 = scalar_select %p333_p11, %s5301_s27, %s335_s0  }
  0x31   : > { %p351_p1 = scmp.ne.s32.totalorder %s5297_s26, %s5293_s25  ;;  %s6313_s24 = sadd.s32 4294967294, %s5341_s20  }
  0x32   : > { %6312 = sst [smem:[#allocation42_spill]] %s5552_s9  ;;  %p352_p2 = scmp.eq.s32.totalorder %s6313_s24, 3 }
  0x33   : > { %p3764_p4 = scmp.ge.s32.totalorder %s5341_s20, 1  ;;  %p5560_p5 = por %p346_p0, %p345_p13 }
  0x34   : > { %p359_p6 = scmp.lt.s32.totalorder %s5341_s20, 5  ;;  %p5565_p9 = por %p352_p2, %p351_p1 }
  0x35   : > { %s6314_s5 = scalar_select %p5560_p5, 1, 0 }
  0x36   : > { %s6315_s13 = scalar_select %p5565_p9, 1, 0 }
  0x37   : > { %p5569_p8 = pnand %p3764_p4, %p359_p6  ;;  %s5343_s0 = smov [#allocation7]  }
  0x38   : > { %6316 = sst [smem:[#allocation43_spill]] %s6315_s13  ;;  %s383_s16 = sshll.u32 %s5343_s0, 4  ;;  %s384_s16 = int_to_ptr.vmem [resolvable:$true] %s383_s16 }
  0x39   : > { %s6317_s28 = scalar_select %p5569_p8, 1, 0 }
  0x3a   : > { %p4218_p11 = pneg %p5569_p8  ;;  %s5344_s17 = smov [#allocation9]  }
  0x3b   : > { %s393_s24 = sshll.u32 %s5344_s17, 4  ;;  %s5345_s23 = smov [#allocation10]   ;;  %s5581_s24 = int_to_ptr.vmem [resolvable:$true] %s393_s24 }
  0x3c   : > { %p5577_p13 = pnand %p4218_p11, %p6279_p10  ;;  %s407_s9 = sshll.u32 %s5345_s23, 4  ;;  %s408_s9 = int_to_ptr.vmem [resolvable:$true] %s407_s9 }
  0x3d   : > { %s4902_s0 = scalar_lea.vmem %s384_s16, 16  ;;  %s4909_s17 = scalar_lea.vmem %s384_s16, 32 }
  0x3e   : > { %p5585_p0 = pneg %p5577_p13  ;;  %p4903_p1 = scmp.ne.s32.totalorder %s384_s16, %s4902_s0 }
  0x3f   : > { %p4910_p6 = scmp.lt.s32.totalorder %s384_s16, %s384_s16  ;;  %p4911_p11 = scmp.lt.s32.totalorder %s4909_s17, %s4902_s0 }
  0x40   : > { %p4905_p2 = pnand %p4903_p1, %p5585_p0 }
  0x41   : > { %p4912_p10 = por %p4911_p11, %p4910_p6 }
  0x42   : > { %p4906_p4 = pneg %p4905_p2 }
  0x44   : > { %p4913_p9 = pnand %p4912_p10, %p4906_p4 }
  0x46   : > { %4916 = shalt.err (!%p4913_p9)
}
  0x47   : > { %s6320_s2 = sld [smem:[#allocation46_spill]]  ;;  %s4928_s25 = scalar_lea.vmem %s5581_s24, 1024 }
  0x48   : > { %p4929_p5 = scmp.ne.s32.totalorder %s5581_s24, %s4928_s25  ;;  %p4936_p12 = scmp.lt.s32.totalorder %s5581_s24, %s5581_s24 }
  0x49   : > { %p4937_p6 = scmp.lt.s32.totalorder %s4928_s25, %s4928_s25 }
  0x4a   : > { %p4931_p1 = pnand %p4929_p5, %p5585_p0 }
  0x4b   : > { %p4938_p10 = por %p4937_p6, %p4936_p12 }
  0x4c   : > { %p4932_p2 = pneg %p4931_p1 }
  0x4d   : > { %4224 = dma.hbm_to_vmem [thread:$0]  (!%p5577_p13), %s6320_s2, 16, %s384_s16, [#allocation8]  }
  0x4e   : > { %p4939_p9 = pnand %p4938_p10, %p4932_p2 }
  0x50   : > { %4942 = shalt.err (!%p4939_p9)
}
  0x51   : > { %s6284_s0 = smov 128   ;;  %s6285_s13 = smov 8  }
  0x52   : > { %s6321_s3 = sld [smem:[#allocation47_spill]]  ;;  %s4954_s23 = scalar_lea.vmem %s408_s9, 32 }
  0x53   : > { %p4955_p5 = scmp.ne.s32.totalorder %s408_s9, %s4954_s23  ;;  %p4962_p11 = scmp.lt.s32.totalorder %s408_s9, %s408_s9 }
  0x54   : > { %p4963_p1 = scmp.lt.s32.totalorder %s4954_s23, %s4954_s23 }
  0x55   : > { %p4957_p12 = pnand %p4955_p5, %p5585_p0 }
  0x56   : > { %p4964_p2 = por %p4963_p1, %p4962_p11 }
  0x57   : > { %p4958_p4 = pneg %p4957_p12 }
  0x58   : > { %4227 = dma.hbm_to_vmem [thread:$0]  (!%p5577_p13), %s6321_s3, 1024, %s5581_s24, [#allocation8], %s6284_s0, %s6284_s0, %s6285_s13  }
  0x59   : > { %p4965_p6 = pnand %p4964_p2, %p4958_p4 }
  0x5b   : > { %4968 = shalt.err (!%p4965_p6)
}
  0x5c   : > { %s6322_s4 = sld [smem:[#allocation48_spill]]  ;;  %s5348_s16 = smov [#allocation15]  }
  0x5d   : > { %s442_s24 = sshll.u32 %s5348_s16, 4  ;;  %s5349_s17 = smov [#allocation18]   ;;  %s443_s24 = int_to_ptr.vmem [resolvable:$true] %s442_s24 }
  0x5e   : > { %s466_s0 = sshll.u32 %s5349_s17, 4  ;;  %s4980_s13 = scalar_lea.vmem %s443_s24, 32  ;;  %s467_s0 = int_to_ptr.vmem [resolvable:$true] %s466_s0 }
  0x5f   : > { %p4981_p10 = scmp.ne.s32.totalorder %s443_s24, %s4980_s13  ;;  %p4988_p12 = scmp.lt.s32.totalorder %s443_s24, %s443_s24 }
  0x60   : > { %p4989_p4 = scmp.lt.s32.totalorder %s4980_s13, %s4980_s13 }
  0x61   : > { %p4983_p9 = pnand %p4981_p10, %p5585_p0 }
  0x62   : > { %4230 = dma.hbm_to_vmem [thread:$0]  (!%p5577_p13), %s6322_s4, 32, %s408_s9, [#allocation11]  }
  0x63   : > { %p4984_p5 = pneg %p4983_p9  ;;  %p4990_p11 = por %p4989_p4, %p4988_p12 }
  0x65   : > { %p4991_p1 = pnand %p4990_p11, %p4984_p5 }
  0x67   : > { %4994 = shalt.err (!%p4991_p1)
}
  0x68   : > { %4239 = dma.hbm_to_vmem [thread:$0]  (!%p5577_p13), %s6265_s8, 32, %s443_s24, [#allocation16]  }
  0x69   : > { %s5006_s9 = scalar_lea.vmem %s467_s0, 512  ;;  %p5014_p10 = scmp.lt.s32.totalorder %s467_s0, %s467_s0 }
  0x6a   : > { %p5007_p2 = scmp.ne.s32.totalorder %s467_s0, %s5006_s9  ;;  %p5015_p9 = scmp.lt.s32.totalorder %s5006_s9, %s5006_s9 }
  0x6c   : > { %p5009_p6 = pnand %p5007_p2, %p5585_p0  ;;  %p5016_p7 = por %p5015_p9, %p5014_p10 }
  0x6e   : > { %p5010_p8 = pneg %p5009_p6 }
  0x70   : > { %p5017_p3 = pnand %p5016_p7, %p5010_p8 }
  0x72   : > { %5020 = shalt.err (!%p5017_p3)
}
  0x73   : > { %s5350_s13 = smov 64   ;;  %s5351_s25 = smov 4  }
  0x74   : > { %4245 = dma.hbm_to_vmem [thread:$0]  (!%p5577_p13), %s6268_s11, 512, %s467_s0, [#allocation19], %s5350_s13, %s5350_s13, %s5351_s25  }
  0x75   : > { %s5352_s24 = smov [#allocation4]   ;;  %s5353_s23 = smov [#allocation13]  }
  0x76   : > { %s372_s2 = sshll.u32 %s5352_s24, 4  ;;  %s418_s3 = sshll.u32 %s5353_s23, 4  ;;  %s373_s2 = int_to_ptr.vmem [resolvable:$true] %s372_s2  ;;  %s419_s3 = int_to_ptr.vmem [resolvable:$true] %s418_s3 }
  0x77   : > { %s5032_s4 = scalar_lea.vmem %s373_s2, 64  ;;  %p5040_p3 = scmp.lt.s32.totalorder %s373_s2, %s373_s2 }
  0x78   : > { %p5033_p5 = scmp.ne.s32.totalorder %s373_s2, %s5032_s4  ;;  %p5041_p8 = scmp.lt.s32.totalorder %s5032_s4, %s5032_s4 }
  0x7a   : > { %p5035_p12 = pnand %p5033_p5, %p5585_p0  ;;  %p5042_p4 = por %p5041_p8, %p5040_p3 }
  0x7c   : > { %p5036_p7 = pneg %p5035_p12 }
  0x7e   : > { %p5043_p11 = pnand %p5042_p4, %p5036_p7 }
  0x80   : > { %5046 = shalt.err (!%p5043_p11)
}
  0x81   : > { %s6323_s1 = sld [smem:[#allocation45_spill]]  ;;  %s5058_s0 = scalar_lea.vmem %s419_s3, 32 }
  0x82   : > { %p5059_p1 = scmp.ne.s32.totalorder %s419_s3, %s5058_s0  ;;  %p5066_p10 = scmp.lt.s32.totalorder %s419_s3, %s419_s3 }
  0x83   : > { %p5067_p9 = scmp.lt.s32.totalorder %s5058_s0, %s5058_s0 }
  0x84   : > { %p5061_p2 = pnand %p5059_p1, %p5585_p0 }
  0x85   : > { %p5068_p5 = por %p5067_p9, %p5066_p10 }
  0x86   : > { %p5062_p6 = pneg %p5061_p2 }
  0x87   : > { %4221 = dma.hbm_to_vmem [thread:$0]  (!%p5577_p13), %s6323_s1, 64, %s373_s2, [#allocation5]  }
  0x88   : > { %p5069_p12 = pnand %p5068_p5, %p5062_p6 }
  0x8a   : > { %5072 = shalt.err (!%p5069_p12)
}
  0x8b   : > { %s6324_s6 = sld [smem:[#allocation50_spill]]  ;;  %s5354_s25 = smov [#allocation14]  }
  0x8c   : > { %s428_s17 = sshll.u32 %s5354_s25, 4  ;;  %s5355_s24 = smov [#allocation17]   ;;  %s429_s17 = int_to_ptr.vmem [resolvable:$true] %s428_s17 }
  0x8d   : > { %s456_s2 = sshll.u32 %s5355_s24, 4  ;;  %s5084_s23 = scalar_lea.vmem %s429_s17, 4096  ;;  %s457_s2 = int_to_ptr.vmem [resolvable:$true] %s456_s2 }
  0x8e   : > { %p5085_p7 = scmp.ne.s32.totalorder %s429_s17, %s5084_s23  ;;  %p5092_p4 = scmp.lt.s32.totalorder %s429_s17, %s429_s17 }
  0x8f   : > { %p5093_p11 = scmp.lt.s32.totalorder %s5084_s23, %s5084_s23 }
  0x90   : > { %p5087_p3 = pnand %p5085_p7, %p5585_p0 }
  0x91   : > { %4233 = dma.hbm_to_vmem [thread:$0]  (!%p5577_p13), %s6324_s6, 32, %s419_s3, [#allocation8]  }
  0x92   : > { %p5088_p8 = pneg %p5087_p3  ;;  %p5094_p1 = por %p5093_p11, %p5092_p4 }
  0x94   : > { %p5095_p2 = pnand %p5094_p1, %p5088_p8 }
  0x96   : > { %5098 = shalt.err (!%p5095_p2)
}
  0x97   : > { %s6325_s9 = smov 8   ;;  %s6326_s16 = smov 128  }
  0x98   : > { %s6327_s7 = sld [smem:[#allocation51_spill]]  ;;  %s5110_s4 = scalar_lea.vmem %s457_s2, 16 }
  0x99   : > { %p5111_p6 = scmp.ne.s32.totalorder %s457_s2, %s5110_s4  ;;  %s5117_s13 = scalar_lea.vmem %s457_s2, 32 }
  0x9a   : > { %p5118_p5 = scmp.lt.s32.totalorder %s457_s2, %s457_s2  ;;  %p5119_p12 = scmp.lt.s32.totalorder %s5117_s13, %s5110_s4 }
  0x9b   : > { %p5113_p10 = pnand %p5111_p6, %p5585_p0 }
  0x9c   : > { %p5120_p7 = por %p5119_p12, %p5118_p5 }
  0x9d   : > { %p5114_p9 = pneg %p5113_p10 }
  0x9e   : > { %4236 = dma.hbm_to_vmem [thread:$0]  (!%p5577_p13), %s6327_s7, 4096, %s429_s17, [#allocation11], %s6326_s16, %s6326_s16, %s6325_s9  }
  0x9f   : > { %p5121_p3 = pnand %p5120_p7, %p5114_p9 }
  0xa1   : > { %5124 = shalt.err (!%p5121_p3)
}
  0xa2   : > { %4242 = dma.hbm_to_vmem [thread:$0]  (!%p5577_p13), %s6267_s10, 16, %s457_s2, [#allocation16]  }
  0xa3   : > { %s5356_s17 = smov [#allocation20]  }
  0xa4   : > { %s480_s23 = sshll.u32 %s5356_s17, 4  ;;  %s481_s23 = int_to_ptr.vmem [resolvable:$true] %s480_s23 }
  0xa5   : > { %s5136_s9 = scalar_lea.vmem %s481_s23, 16  ;;  %s5143_s16 = scalar_lea.vmem %s481_s23, 32 }
  0xa6   : > { %p5137_p8 = scmp.ne.s32.totalorder %s481_s23, %s5136_s9  ;;  %p5144_p1 = scmp.lt.s32.totalorder %s481_s23, %s481_s23 }
  0xa7   : > { %p5145_p2 = scmp.lt.s32.totalorder %s5143_s16, %s5136_s9 }
  0xa8   : > { %p5139_p4 = pnand %p5137_p8, %p5585_p0 }
  0xa9   : > { %p5146_p6 = por %p5145_p2, %p5144_p1 }
  0xaa   : > { %p5140_p11 = pneg %p5139_p4 }
  0xac   : > { %p5147_p10 = pnand %p5146_p6, %p5140_p11 }
  0xae   : > { %5150 = shalt.err (!%p5147_p10)
}
  0xaf   : > { %4248 = dma.hbm_to_vmem [thread:$0]  (!%p5577_p13), %s6269_s12, 16, %s481_s23, [#allocation19]  }
  0xb0   : > { %p3775_p9 = scmp.ge.s32.totalorder %s5341_s20, 4 }
  0xb1   : > { %s6328_s2 = sld [smem:[#allocation38_spill]] (!%p3775_p9) }
  0xb2   : > { %487 = sbr.rel (%p3775_p9) target bundleno = 217 (0xd9), region = 60 }
  0xb7   : > { %p6329_p5 = scmp.ne.s32.totalorder %s6328_s2, 0 }
  0xb8   : > { %s6330_s27 = sld [smem:[#allocation36_spill]] (%p6329_p5)  ;;  %s492_s4 = sand.u32 (%p6329_p5), 1, %s5321_s15  }
  0xb9   : > { %490 = sbr.rel (!%p6329_p5) target bundleno = 199 (0xc7), region = 64  ;;  %s3776_s25 = sshll.u32 (%p6329_p5), %s492_s4, 6 }
  0xba   : > { %s6331_s16 = sld [smem:[#allocation44_spill]] (%p6329_p5)  ;;  %s494_s23 = scalar_lea.vmem (%p6329_p5), [#allocation3], %s3776_s25 }
  0xbe   : > { %s4132_s13 = sshll.u32 %s6330_s27, 4 }
  0xbf   : > { %s497_s24 = sadd.s32 %s5337_s19, %s4132_s13 }
  0xc0   : > { %s3779_s17 = sshll.u32 %s497_s24, 3 }
  0xc1   : > { %s499_s1 = scalar_lea.vmem %s6331_s16, %s3779_s17 }
  0xc2   : > { %v542_v0 = vld [vmem:[%s499_s1] sm:$0xff]  ;;  %v544_v1 = vld [vmem:[%s499_s1 + $0x10] sm:$0xff] }
  0xc3   : > { %v546_v2 = vld [vmem:[%s499_s1 + $0x20] sm:$0xff]  ;;  %543 = vst [vmem:[%s494_s23] sm:$0xff] %v542_v0  ;;  %545 = vst [vmem:[%s494_s23 + $0x8] sm:$0xff] %v544_v1  ;;  %v548_v3 = vld [vmem:[%s499_s1 + $0x30] sm:$0xff] }
  0xc4   : > { %547 = vst [vmem:[%s494_s23 + $0x10] sm:$0xff] %v546_v2  ;;  %v550_v4 = vld [vmem:[%s499_s1 + $0x40] sm:$0xff]  ;;  %v552_v5 = vld [vmem:[%s499_s1 + $0x50] sm:$0xff]  ;;  %549 = vst [vmem:[%s494_s23 + $0x18] sm:$0xff] %v548_v3 }
  0xc5   : > { %551 = vst [vmem:[%s494_s23 + $0x20] sm:$0xff] %v550_v4  ;;  %553 = vst [vmem:[%s494_s23 + $0x28] sm:$0xff] %v552_v5  ;;  %v554_v6 = vld [vmem:[%s499_s1 + $0x60] sm:$0xff]  ;;  %v556_v7 = vld [vmem:[%s499_s1 + $0x70] sm:$0xff] }
  0xc6   : > { %555 = vst [vmem:[%s494_s23 + $0x30] sm:$0xff] %v554_v6  ;;  %557 = vst [vmem:[%s494_s23 + $0x38] sm:$0xff] %v556_v7 }
  0xc7 PF: > { %s6332_s3 = sld [smem:[#allocation36_spill]]  ;;  %s564_s0 = sand.u32 1, %s5341_s20  }
  0xc8   : > { %s566_s2 = sand.u32 1, %s5313_s30   ;;  %s6333_s24 = sld [smem:[#allocation49_spill]] }
  0xc9   : > { %s3780_s27 = sshll.u32 %s566_s2, 11  ;;  %s565_s16 = scalar_lea.sflag [#allocation5], %s564_s0 }
  0xca   : > { %s568_s9 = scalar_lea.vmem [#allocation12], %s3780_s27  ;;  %p6334_p0 = scmp.ne.s32.totalorder %s6309_s14, 0 }
  0xcb   : > { %s576_s18 = sshll.u32 %s568_s9, 4  ;;  %s5357_s23 = smov [#allocation12]   ;;  %s577_s18 = int_to_ptr.vmem [resolvable:$true] %s576_s18 }
  0xcc   : > { %s5163_s1 = scalar_lea.vmem %s577_s18, 32768  ;;  %s5167_s6 = sshll.u32 %s5357_s23, 4  ;;  %s5168_s6 = int_to_ptr.vmem [resolvable:$false] %s5167_s6 }
  0xcd   : > { %s4134_s4 = sshll.u32 %s6332_s3, 15  ;;  %p5164_p13 = scmp.ne.s32.totalorder %s577_s18, %s5163_s1 }
  0xce   : > { %s575_s17 = scalar_lea.hbm %s6333_s24, %s4134_s4  ;;  %s5169_s7 = scalar_lea.vmem %s5168_s6, 65536 }
  0xcf   : > { %p5165_p12 = pnand %p5164_p13, %p6334_p0  ;;  %p5170_p3 = scmp.lt.s32.totalorder %s577_s18, %s5168_s6 }
  0xd0   : > { %p5171_p8 = scmp.lt.s32.totalorder %s5169_s7, %s5163_s1 }
  0xd1   : > { %p5166_p7 = pneg %p5165_p12 }
  0xd2   : > { %p5172_p4 = por %p5171_p8, %p5170_p3 }
  0xd4   : > { %p5173_p11 = pnand %p5172_p4, %p5166_p7 }
  0xd6   : > { %5176 = shalt.err (!%p5173_p11)
}
  0xd7   : > { %s5358_s3 = smov 128   ;;  %s5359_s2 = smov 8  }
  0xd8   : > { %4194 = dma.hbm_to_vmem [thread:$0]  (%p6334_p0), %s575_s17, 32768, %s577_s18, %s565_s16, %s5358_s3, %s5358_s3, %s5359_s2  }
  0xd9 PF: > { %p6335_p1 = scmp.ne.s32.totalorder %s6317_s28, 0 }
  0xda   : > { %s6336_s0 = sld [smem:[#allocation33_spill]] (!%p6335_p1)  ;;  %p6337_p2 = scmp.eq.s32.totalorder (!%p6335_p1), %s5504_s21, 0 }
  0xdb   : > { %588 = sbr.rel (%p6335_p1) target bundleno = 1713 (0x6b1), region = 106 }
  0xe0   : > { %s591_s27 = sand.u32 1, %s6336_s0  }
  0xe1   : > { %s3785_s4 = sshll.u32 %s591_s27, 6 }
  0xe2   : > { %s5692_s13 = scalar_lea.vmem [#allocation3], %s3785_s4 }
  0xe3   : > { %5256 = dma.done.wait (%p6337_p2), [#allocation5], 64   ;;  %p6338_p6 = pmov %p6337_p2 }
  0xe4   : > { %p6339_p10 = pmov %p6337_p2 }
  0xe5   : > { %5258 = vsyncadd (%p6338_p6), [#allocation5], 4294967232 }
  0xe6   : > { %5260 = dma.done.wait (%p6339_p10), [#allocation8], 1040   ;;  %p6340_p9 = pmov %p6337_p2 }
  0xe7   : > { %p6341_p5 = pmov %p6337_p2 }
  0xe8   : > { %5262 = vsyncadd (%p6340_p9), [#allocation8], 4294966256 }
  0xe9   : > { %5264 = dma.done.wait (%p6341_p5), [#allocation11], 32   ;;  %p6342_p13 = pmov %p6337_p2 }
  0xea   : > { %s613_s6 = sand.u32 1, %s5504_s21   ;;  %s615_s7 = sand.u32 1, %s5309_s29  }
  0xeb   : > { %5266 = vsyncadd (%p6342_p13), [#allocation11], 4294967264  ;;  %s3790_s14 = sshll.u32 %s615_s7, 11  ;;  %s614_s28 = scalar_lea.sflag [#allocation5], %s613_s6 }
  0xec   : > { %s5708_s25 = scalar_lea.vmem [#allocation12], %s3790_s14  ;;  %p6343_p0 = scmp.ne.s32.totalorder %s6311_s22, 0 }
  0xee   : > { %5268 = dma.done.wait (%p6343_p0), %s614_s28, 32768  }
  0xef   : > { %5270 = vsyncadd (%p6343_p0), %s614_s28, 4294934528  ;;  %p6344_p12 = pmov %p6337_p2 }
  0xf0   : > { %p6345_p7 = pmov %p6337_p2 }
  0xf1   : > { %5272 = dma.done.wait (%p6344_p12), [#allocation8], 32  }
  0xf2   : > { %5274 = vsyncadd (%p6345_p7), [#allocation8], 4294967264  ;;  %p6346_p3 = pmov %p6337_p2 }
  0xf3   : > { %p6347_p8 = pmov %p6337_p2 }
  0xf4   : > { %5276 = dma.done.wait (%p6346_p3), [#allocation11], 4096  }
  0xf5   : > { %5278 = vsyncadd (%p6347_p8), [#allocation11], 4294963200  ;;  %p6348_p4 = pmov %p6337_p2 }
  0xf6   : > { %p6349_p11 = pmov %p6337_p2 }
  0xf7   : > { %5280 = dma.done.wait (%p6348_p4), [#allocation16], 48  }
  0xf8   : > { %5282 = vsyncadd (%p6349_p11), [#allocation16], 4294967248  ;;  %p6350_p1 = pmov %p6337_p2 }
  0xfa   : > { %5284 = dma.done.wait (%p6350_p1), [#allocation19], 528   ;;  %p6351_p2 = pmov %p6350_p1 }
  0xfb   : > { %s685_s22 = sand.u32 1, %s5297_s26   ;;  %s6352_s9 = sld [smem:[#allocation34_spill]] }
  0xfc   : > { %5286 = vsyncadd (%p6351_p2), [#allocation19], 4294966768  ;;  %s5733_s24 = sshll.u32 %s685_s22, 3 }
  0xfd   : > { %s687_s17 = scalar_lea.vmem [#allocation21], %s5733_s24 }
 0x101   : > { %p3798_p6 = scmp.ne.s32.totalorder %s6352_s9, 0 }
 0x103   : > { %694 = sbr.rel (%p3798_p6) target bundleno = 266 (0x10a), region = 158 }
 0x108   : > { %v5360_v8 = vmov 0.0  }
 0x109   : > { %695 = vst [vmem:[#allocation2] sm:$0xff] %v5360_v8  ;;  %696 = vst [vmem:[#allocation2 + $0x8] sm:$0xff] %v5360_v8 }
 0x10a PF: > { %v697_v9 = vld [vmem:[%s5692_s13] sm:$0xff]  ;;  %v5361_v10 = vmov 1   ;;  %v5362_v11 = vmov 0   ;;  %v698_v12 = vld [vmem:[%s5692_s13 + $0x8] sm:$0xff]  ;;  %v5363_v17 = vmov 2   ;;  %v5364_v20 = vmov 3  }
 0x10b   : > { %4402 = vset.pattern.permute.xlu1 %v5361_v10  ;;  %4401 = vset.pattern.permute.xlu0 %v5362_v11  ;;  %v4427_v13 = vld [vmem:[#allocation9 + $0x34] ss:$8 sps:$4 sm:$0xff]   ;;  %v4429_v14 = vld [vmem:[#allocation9 + $0x30] ss:$8 sps:$4 sm:$0xff]   ;;  %v4430_v15 = vld [vmem:[#allocation9 + $0x24] ss:$8 sps:$4 sm:$0xff]  }
 0x10c   : > { %760 = vperm.xlu1 %4402, %v697_v9   ;;  %708 = vperm.xlu0 %4401, %v697_v9   ;;  %v4432_v16 = vld [vmem:[#allocation9 + $0x20] ss:$8 sps:$4 sm:$0xff]   ;;  %v4433_v18 = vld [vmem:[#allocation9 + $0x14] ss:$8 sps:$4 sm:$0xff]   ;;  %v4435_v19 = vld [vmem:[#allocation9 + $0x10] ss:$8 sps:$4 sm:$0xff]  }
 0x10d   : > { %1049 = vmatprep.mubr.bf16.mxu0 %v5362_v11  ;;  %1025 = vmatprep.subr.bf16.mxu0 %v4427_v13  ;;  %v699_v21 = vld [vmem:[%s5692_s13 + $0x10] sm:$0xff]  ;;  %v700_v24 = vld [vmem:[%s5692_s13 + $0x18] sm:$0xff]  ;;  %v701_v25 = vld [vmem:[%s5692_s13 + $0x20] sm:$0xff]  ;;  %vm1004_vm0 = vcmask 523264   ;;  %s6353_s21 = sld [smem:[#allocation34_spill]] }
 0x10e   : > { %1026 = vmatpush1.bf16.msra.mxu0 %v4429_v14  ;;  %v4436_v22 = vld [vmem:[#allocation9 + $0x4] ss:$8 sps:$4 sm:$0xff]   ;;  %v4438_v23 = vld [vmem:[#allocation9] ss:$8 sps:$4 sm:$0xff]   ;;  %v704_v27 = vld [vmem:[%s5692_s13 + $0x38] sm:$0xff] }
 0x10f   : > { %1027 = vmatprep.subr.bf16.mxu0 %v4430_v15  ;;  %v702_v26 = vld [vmem:[%s5692_s13 + $0x28] sm:$0xff]  ;;  %v703_v28 = vld [vmem:[%s5692_s13 + $0x30] sm:$0xff]  ;;  %v4441_v29 = vld [vmem:[%s5708_s25 + $0x74] ss:$8 sps:$4 sm:$0xff]  }
 0x110   : > { %764 = vperm.xlu1 %4402, %v698_v12   ;;  %713 = vperm.xlu0 %4401, %v698_v12   ;;  %v4442_v30 = vld [vmem:[%s5708_s25 + $0x174] ss:$8 sps:$4 sm:$0xff]   ;;  %v4444_v31 = vld [vmem:[%s5708_s25 + $0x170] ss:$8 sps:$4 sm:$0xff]   ;;  %v4448_v32 = vld [vmem:[%s5708_s25 + $0x164] ss:$8 sps:$4 sm:$0xff]  }
 0x111   : > { %1344 = vmatprep.subr.bf16.mxu1 %v4442_v30  ;;  %v4450_v33 = vld [vmem:[%s5708_s25 + $0x160] ss:$8 sps:$4 sm:$0xff]   ;;  %v4454_v34 = vld [vmem:[%s5708_s25 + $0x154] ss:$8 sps:$4 sm:$0xff]   ;;  %v4456_v35 = vld [vmem:[%s5708_s25 + $0x150] ss:$8 sps:$4 sm:$0xff]  }
 0x112   : > { %1028 = vmatpush1.bf16.msra.mxu0 %v4432_v16  ;;  %1345 = vmatpush1.bf16.msra.mxu1 %v4444_v31  ;;  %v4460_v36 = vld [vmem:[%s5708_s25 + $0x144] ss:$8 sps:$4 sm:$0xff]   ;;  %v4462_v37 = vld [vmem:[%s5708_s25 + $0x140] ss:$8 sps:$4 sm:$0xff]   ;;  %v4466_v38 = vld [vmem:[%s5708_s25 + $0x134] ss:$8 sps:$4 sm:$0xff]  }
 0x113   : > { %1029 = vmatprep.subr.bf16.mxu0 %v4433_v18  ;;  %1346 = vmatprep.subr.bf16.mxu1 %v4448_v32  ;;  %v4468_v39 = vld [vmem:[%s5708_s25 + $0x130] ss:$8 sps:$4 sm:$0xff]   ;;  %v4472_v40 = vld [vmem:[%s5708_s25 + $0x124] ss:$8 sps:$4 sm:$0xff]   ;;  %v4474_v41 = vld [vmem:[%s5708_s25 + $0x120] ss:$8 sps:$4 sm:$0xff]  }
 0x114   : > { %4404 = vset.pattern.permute.xlu1 %v5363_v17  ;;  %4403 = vset.pattern.permute.xlu0 %v5363_v17  ;;  %v4478_v42 = vld [vmem:[%s5708_s25 + $0x114] ss:$8 sps:$4 sm:$0xff]   ;;  %v4480_v43 = vld [vmem:[%s5708_s25 + $0x110] ss:$8 sps:$4 sm:$0xff]   ;;  %v4484_v44 = vld [vmem:[%s5708_s25 + $0x104] ss:$8 sps:$4 sm:$0xff]  }
 0x115   : > { %817 = vperm.xlu1 %4404, %v698_v12   ;;  %813 = vperm.xlu0 %4403, %v697_v9   ;;  %v4486_v45 = vld [vmem:[%s5708_s25 + $0x100] ss:$8 sps:$4 sm:$0xff]   ;;  %v4490_v46 = vld [vmem:[%s5708_s25 + $0x1f4] ss:$8 sps:$4 sm:$0xff]   ;;  %v4492_v47 = vld [vmem:[%s5708_s25 + $0x1f0] ss:$8 sps:$4 sm:$0xff]  }
 0x116   : > { %1030 = vmatpush1.bf16.msra.mxu0 %v4435_v19  ;;  %1347 = vmatpush1.bf16.msra.mxu1 %v4450_v33  ;;  %v4496_v48 = vld [vmem:[%s5708_s25 + $0x1e4] ss:$8 sps:$4 sm:$0xff]   ;;  %v4498_v49 = vld [vmem:[%s5708_s25 + $0x1e0] ss:$8 sps:$4 sm:$0xff]   ;;  %v4502_v50 = vld [vmem:[%s5708_s25 + $0x1d4] ss:$8 sps:$4 sm:$0xff]  }
 0x117   : > { %1031 = vmatprep.subr.bf16.mxu0 %v4436_v22  ;;  %1348 = vmatprep.subr.bf16.mxu1 %v4454_v34  ;;  %v4504_v51 = vld [vmem:[%s5708_s25 + $0x1d0] ss:$8 sps:$4 sm:$0xff]   ;;  %v4508_v52 = vld [vmem:[%s5708_s25 + $0x1c4] ss:$8 sps:$4 sm:$0xff]   ;;  %v4510_v53 = vld [vmem:[%s5708_s25 + $0x1c0] ss:$8 sps:$4 sm:$0xff]  }
 0x118   : > { %v4514_v54 = vld [vmem:[%s5708_s25 + $0x1b4] ss:$8 sps:$4 sm:$0xff]   ;;  %v5798_v59 = vld [vmem:[#allocation4 + $0x1] ss:$0 sm:$0xff]  ;;  %v5800_v60 = vld [vmem:[#allocation4] ss:$0 sm:$0xff] }
 0x119   : > { %4405 = vset.pattern.permute.xlu1 %v5364_v20  ;;  %4406 = vset.pattern.permute.xlu0 %v5364_v20  ;;  %v5802_v61 = vld [vmem:[#allocation4 + $0x2] ss:$0 sm:$0xff]  ;;  %v5810_v6 = vld [vmem:[#allocation4 + $0x3] ss:$0 sm:$0xff]  ;;  %v5814_v16 = vld [vmem:[#allocation7] ss:$0 sm:$0xff] }
 0x11a   : > { %866 = vperm.xlu1 %4405, %v697_v9   ;;  %870 = vperm.xlu0 %4406, %v698_v12   ;;  %v4451_v34 = vld [vmem:[%s5708_s25 + $0x50] ss:$8 sps:$4 sm:$0xff]   ;;  %p4072_p10 = scmp.ne.s32.totalorder %s6353_s21, 1 }
 0x11b   : > { %1032 = vmatpush1.bf16.msra.mxu0 %v4438_v23  ;;  %1349 = vmatpush1.bf16.msra.mxu1 %v4456_v35  ;;  %v4459_v35 = vld [vmem:[%s5708_s25 + $0x44] ss:$8 sps:$4 sm:$0xff]   ;;  %s6354_s1 = sld [smem:[#allocation52_spill]] (!%p4072_p10) }
 0x11c   : > { %1545 = vmatprep.subr.bf16.mxu0 %v4441_v29  ;;  %1350 = vmatprep.subr.bf16.mxu1 %v4460_v36  ;;  %v4453_v29 = vld [vmem:[%s5708_s25 + $0x54] ss:$8 sps:$4 sm:$0xff]  }
 0x11e   : > { %4407 = vset.pattern.permute.xlu1 %v5362_v11  ;;  %4408 = vset.pattern.permute.xlu0 %v5361_v10 }
 0x11f   : > { %718 = vperm.xlu1 %4407, %v699_v21   ;;  %768 = vperm.xlu0 %4408, %v699_v21  }
 0x120   : > { %1351 = vmatpush1.bf16.msra.mxu1 %v4462_v37 }
 0x121   : > { %1352 = vmatprep.subr.bf16.mxu1 %v4466_v38 }
 0x123   : > { %723 = vperm.xlu1 %4407, %v700_v24   ;;  %4411 = vset.pattern.permute.xlu0 %v5363_v17 }
 0x124   : > { %825 = vperm.xlu0 %4411, %v700_v24   ;;  %1353 = vmatpush1.bf16.msra.mxu1 %v4468_v39 }
 0x125   : > { %1354 = vmatprep.subr.bf16.mxu1 %v4472_v40 }
 0x127   : > { %4409 = vset.pattern.permute.xlu1 %v5361_v10 }
 0x128   : > { %772 = vperm.xlu1 %4409, %v700_v24   ;;  %4413 = vset.pattern.permute.xlu0 %v5362_v11 }
 0x129   : > { %728 = vperm.xlu0 %4413, %v701_v25   ;;  %1355 = vmatpush1.bf16.msra.mxu1 %v4474_v41 }
 0x12a   : > { %1356 = vmatprep.subr.bf16.mxu1 %v4478_v42  ;;  %v4457_v42 = vld [vmem:[%s5708_s25 + $0x40] ss:$8 sps:$4 sm:$0xff]  }
 0x12c   : > { %4410 = vset.pattern.permute.xlu1 %v5363_v17 }
 0x12d   : > { %821 = vperm.xlu1 %4410, %v699_v21   ;;  %4416 = vset.pattern.permute.xlu0 %v5361_v10 }
 0x12e   : > { %780 = vperm.xlu0 %4416, %v702_v26   ;;  %1357 = vmatpush1.bf16.msra.mxu1 %v4480_v43  ;;  %v4465_v43 = vld [vmem:[%s5708_s25 + $0x34] ss:$8 sps:$4 sm:$0xff]  }
 0x12f   : > { %1358 = vmatprep.subr.bf16.mxu1 %v4484_v44 }
 0x131   : > { %4412 = vset.pattern.permute.xlu1 %v5364_v20 }
 0x132   : > { %874 = vperm.xlu1 %4412, %v699_v21   ;;  %4418 = vset.pattern.permute.xlu0 %v5364_v20 }
 0x133   : > { %882 = vperm.xlu0 %4418, %v701_v25   ;;  %1359 = vmatpush1.bf16.msra.mxu1 %v4486_v45 }
 0x134   : > { %1360 = vmatprep.subr.bf16.mxu1 %v4490_v46 }
 0x136   : > { %878 = vperm.xlu1 %4412, %v700_v24   ;;  %v4439_v24 = vld [vmem:[%s5708_s25 + $0x70] ss:$8 sps:$4 sm:$0xff]  }
 0x137   : > { %4421 = vset.pattern.permute.xlu0 %v5362_v11  ;;  %1361 = vmatpush2.bf16.msra.mxu1 %v4492_v47 }
 0x138   : > { %743 = vperm.xlu0 %4421, %v704_v27   ;;  %1362 = vmatprep.subr.bf16.mxu1 %v4496_v48  ;;  %v4463_v48 = vld [vmem:[%s5708_s25 + $0x30] ss:$8 sps:$4 sm:$0xff]  }
 0x13a   : > { %4414 = vset.pattern.permute.xlu1 %v5362_v11 }
 0x13b   : > { %733 = vperm.xlu1 %4414, %v702_v26   ;;  %1363 = vmatpush2.bf16.msra.mxu1 %v4498_v49 }
 0x13c   : > { %4423 = vset.pattern.permute.xlu0 %v5363_v17  ;;  %1364 = vmatprep.subr.bf16.mxu1 %v4502_v50  ;;  %v4471_v50 = vld [vmem:[%s5708_s25 + $0x24] ss:$8 sps:$4 sm:$0xff]  }
 0x13d   : > { %837 = vperm.xlu0 %4423, %v703_v28  }
 0x13f   : > { %4415 = vset.pattern.permute.xlu1 %v5361_v10  ;;  %1365 = vmatpush2.bf16.msra.mxu1 %v4504_v51 }
 0x140   : > { %776 = vperm.xlu1 %4415, %v701_v25   ;;  %1366 = vmatprep.subr.bf16.mxu1 %v4508_v52 }
 0x141   : > { %4426 = vset.pattern.permute.xlu0 %v5364_v20 }
 0x142   : > { %894 = vperm.xlu0 %4426, %v704_v27  }
 0x143   : > { %1367 = vmatpush2.bf16.msra.mxu1 %v4510_v53 }
 0x144   : > { %4417 = vset.pattern.permute.xlu1 %v5363_v17  ;;  %1368 = vmatprep.subr.bf16.mxu1 %v4514_v54  ;;  %v4469_v54 = vld [vmem:[%s5708_s25 + $0x20] ss:$8 sps:$4 sm:$0xff]  }
 0x145   : > { %829 = vperm.xlu1 %4417, %v701_v25  }
 0x149   : > { %833 = vperm.xlu1 %4417, %v702_v26  }
 0x14d   : > { %4419 = vset.pattern.permute.xlu1 %v5364_v20 }
 0x14e   : > { %886 = vperm.xlu1 %4419, %v702_v26  }
 0x152   : > { %4420 = vset.pattern.permute.xlu1 %v5362_v11 }
 0x153   : > { %738 = vperm.xlu1 %4420, %v703_v28  }
 0x157   : > { %4422 = vset.pattern.permute.xlu1 %v5361_v10 }
 0x158   : > { %784 = vperm.xlu1 %4422, %v703_v28  }
 0x15c   : > { %788 = vperm.xlu1 %4422, %v704_v27  }
 0x160   : > { %4424 = vset.pattern.permute.xlu1 %v5363_v17 }
 0x161   : > { %841 = vperm.xlu1 %4424, %v704_v27   ;;  %v4447_v27 = vld [vmem:[%s5708_s25 + $0x64] ss:$8 sps:$4 sm:$0xff]  }
 0x165   : > { %4425 = vset.pattern.permute.xlu1 %v5364_v20 }
 0x166   : > { %890 = vperm.xlu1 %4425, %v703_v28   ;;  %v4445_v28 = vld [vmem:[%s5708_s25 + $0x60] ss:$8 sps:$4 sm:$0xff]  }
 0x187   : > { %v761_v55 = vpop.permute.xlu1 %760  ;;  %v709_v56 = vpop.permute.xlu0 %708 }
 0x188   : > { %v795_v62 = vmul.f32 %v5798_v59, %v761_v55  ;;  %v750_v63 = vmul.f32 %v5800_v60, %v709_v56 }
 0x18a   : > { %v803_v7 = vadd.f32 %v795_v62, %v750_v63  ;;  %v4475_v63 = vld [vmem:[%s5708_s25 + $0x10] ss:$8 sps:$4 sm:$0xff]  }
 0x18b   : > { %v765_v57 = vpop.permute.xlu1 %764  ;;  %v714_v58 = vpop.permute.xlu0 %713 }
 0x18c   : > { %v796_v0 = vmul.f32 %v5798_v59, %v765_v57  ;;  %v751_v1 = vmul.f32 %v5800_v60, %v714_v58  ;;  %v4477_v57 = vld [vmem:[%s5708_s25 + $0x14] ss:$8 sps:$4 sm:$0xff]  }
 0x18e   : > { %v804_v8 = vadd.f32 %v796_v0, %v751_v1 }
 0x190   : > { %v818_v2 = vpop.permute.xlu1 %817  ;;  %v814_v3 = vpop.permute.xlu0 %813 }
 0x191   : > { %v849_v4 = vmul.f32 %v5802_v61, %v818_v2  ;;  %v848_v5 = vmul.f32 %v5802_v61, %v814_v3  ;;  %v4483_v3 = vld [vmem:[%s5708_s25 + $0x4] ss:$8 sps:$4 sm:$0xff]  }
 0x193   : > { %v857_v12 = vadd.f32 %v849_v4, %v804_v8  ;;  %v856_v13 = vadd.f32 %v848_v5, %v803_v7  ;;  %v4481_v7 = vld [vmem:[%s5708_s25] ss:$8 sps:$4 sm:$0xff]  }
 0x195   : > { %v867_v9 = vpop.permute.xlu1 %866  ;;  %v871_v10 = vpop.permute.xlu0 %870 }
 0x196   : > { %v901_v14 = vmul.f32 %v5810_v6, %v867_v9  ;;  %v902_v15 = vmul.f32 %v5810_v6, %v871_v10  ;;  %v4489_v9 = vld [vmem:[%s5708_s25 + $0xf4] ss:$8 sps:$4 sm:$0xff]  }
 0x198   : > { %v909_v17 = vadd.f32 %v901_v14, %v856_v13  ;;  %v910_v18 = vadd.f32 %v902_v15, %v857_v12  ;;  %v4487_v14 = vld [vmem:[%s5708_s25 + $0xf0] ss:$8 sps:$4 sm:$0xff]   ;;  %v4495_v15 = vld [vmem:[%s5708_s25 + $0xe4] ss:$8 sps:$4 sm:$0xff]  }
 0x19a   : > { %v924_v19 = vadd.f32 %v5814_v16, %v909_v17  ;;  %v925_v20 = vadd.f32 %v5814_v16, %v910_v18  ;;  %v719_v21 = vpop.permute.xlu1 %718  ;;  %v769_v31 = vpop.permute.xlu0 %768 }
 0x19b   : > { %v752_v32 = vmul.f32 %v5800_v60, %v719_v21  ;;  %v797_v33 = vmul.f32 %v5798_v59, %v769_v31 }
 0x19c   : > { %v932_v22 = vmax.f32 %v924_v19, 0.0  ;;  %v933_v23 = vmax.f32 %v925_v20, 0.0 }
 0x19d   : > { %v805_v39 = vadd.f32 %v797_v33, %v752_v32  ;;  %v4507_v32 = vld [vmem:[%s5708_s25 + $0xc4] ss:$8 sps:$4 sm:$0xff]  }
 0x19e   : > { %v940_v25 = vpack.c.bf16 %v933_v23, %v932_v22  ;;  %v724_v26 = vpop.permute.xlu1 %723  ;;  %v4493_v23 = vld [vmem:[%s5708_s25 + $0xe0] ss:$8 sps:$4 sm:$0xff]  }
 0x19f   : > { %v753_v36 = vmul.f32 %v5800_v60, %v724_v26  ;;  %v826_v41 = vpop.permute.xlu0 %825 }
 0x1a0   : > { %3812 = vmatmul.mubr.msk.bf16.vlgmr.msra.gmra.mxu0 %vm1004_vm0, %v940_v25  ;;  %v851_v46 = vmul.f32 %v5802_v61, %v826_v41  ;;  %v4501_v25 = vld [vmem:[%s5708_s25 + $0xd4] ss:$8 sps:$4 sm:$0xff]  }
 0x1a1   : > { %1059 = vmatprep.mubr.bf16.mxu0 %v5362_v11  ;;  %1546 = vmatpush1.bf16.msra.mxu0 %v4439_v24 }
 0x1a2   : > { %1547 = vmatprep.subr.bf16.mxu0 %v4447_v27 }
 0x1a3   : > { %v773_v30 = vpop.permute.xlu1 %772 }
 0x1a4   : > { %v798_v37 = vmul.f32 %v5798_v59, %v773_v30  ;;  %v729_v58 = vpop.permute.xlu0 %728  ;;  %v4499_v30 = vld [vmem:[%s5708_s25 + $0xd0] ss:$8 sps:$4 sm:$0xff]  }
 0x1a5   : > { %1548 = vmatpush1.bf16.msra.mxu0 %v4445_v28  ;;  %v754_v12 = vmul.f32 %v5800_v60, %v729_v58 }
 0x1a6   : > { %1549 = vmatprep.subr.bf16.mxu0 %v4453_v29  ;;  %v806_v44 = vadd.f32 %v798_v37, %v753_v36 }
 0x1a8   : > { %v822_v38 = vpop.permute.xlu1 %821  ;;  %v859_v52 = vadd.f32 %v851_v46, %v806_v44 }
 0x1a9   : > { %v850_v40 = vmul.f32 %v5802_v61, %v822_v38  ;;  %1550 = vmatpush1.bf16.msra.mxu0 %v4451_v34  ;;  %v781_v5 = vpop.permute.xlu0 %780  ;;  %v4513_v38 = vld [vmem:[%s5708_s25 + $0xb4] ss:$8 sps:$4 sm:$0xff]  }
 0x1aa   : > { %1551 = vmatprep.subr.bf16.mxu0 %v4459_v35  ;;  %v800_v21 = vmul.f32 %v5798_v59, %v781_v5  ;;  %v4505_v35 = vld [vmem:[%s5708_s25 + $0xc0] ss:$8 sps:$4 sm:$0xff]  }
 0x1ab   : > { %v858_v45 = vadd.f32 %v850_v40, %v805_v39  ;;  %v4511_v40 = vld [vmem:[%s5708_s25 + $0xb0] ss:$8 sps:$4 sm:$0xff]  }
 0x1ad   : > { %v875_v47 = vpop.permute.xlu1 %874  ;;  %1552 = vmatpush1.bf16.msra.mxu0 %v4457_v42 }
 0x1ae   : > { %v903_v49 = vmul.f32 %v5810_v6, %v875_v47  ;;  %1553 = vmatprep.subr.bf16.mxu0 %v4465_v43  ;;  %v883_v18 = vpop.permute.xlu0 %882 }
 0x1af   : > { %v905_v24 = vmul.f32 %v5810_v6, %v883_v18  ;;  %v4529_v18 = vld [vmem:[%s5708_s25 + $0x80] ss:$8 sps:$4 sm:$0xff]  }
 0x1b0   : > { %v911_v51 = vadd.f32 %v903_v49, %v858_v45 }
 0x1b1   : > { %v879_v53 = vpop.permute.xlu1 %878  ;;  %1554 = vmatpush1.bf16.msra.mxu0 %v4463_v48 }
 0x1b2   : > { %v926_v55 = vadd.f32 %v5814_v16, %v911_v51  ;;  %v904_v56 = vmul.f32 %v5810_v6, %v879_v53  ;;  %1555 = vmatprep.subr.bf16.mxu0 %v4471_v50 }
 0x1b3   : > { %v744_v44 = vpop.permute.xlu0 %743 }
 0x1b4   : > { %v912_v62 = vadd.f32 %v904_v56, %v859_v52  ;;  %v934_v0 = vmax.f32 %v926_v55, 0.0  ;;  %v757_v50 = vmul.f32 %v5800_v60, %v744_v44  ;;  %v4535_v44 = vld [vmem:[%s5708_s25 + $0x370] ss:$8 sps:$4 sm:$0xff]  }
 0x1b5   : > { %1556 = vmatpush1.bf16.msra.mxu0 %v4469_v54 }
 0x1b6   : > { %v927_v1 = vadd.f32 %v5814_v16, %v912_v62  ;;  %v734_v2 = vpop.permute.xlu1 %733  ;;  %1557 = vmatprep.subr.bf16.mxu0 %v4477_v57 }
 0x1b7   : > { %v755_v19 = vmul.f32 %v5800_v60, %v734_v2 }
 0x1b8   : > { %v935_v4 = vmax.f32 %v927_v1, 0.0  ;;  %v838_v48 = vpop.permute.xlu0 %837 }
 0x1b9   : > { %1558 = vmatpush1.bf16.msra.mxu0 %v4475_v63  ;;  %v808_v28 = vadd.f32 %v800_v21, %v755_v19  ;;  %v854_v58 = vmul.f32 %v5802_v61, %v838_v48  ;;  %v4516_v63 = vld [vmem:[%s5708_s25 + $0x1b0] ss:$8 sps:$4 sm:$0xff]   ;;  %v4532_v19 = vld [vmem:[%s5708_s25 + $0x184] ss:$8 sps:$4 sm:$0xff]   ;;  %v4534_v21 = vld [vmem:[%s5708_s25 + $0x180] ss:$8 sps:$4 sm:$0xff]  }
 0x1ba   : > { %v941_v8 = vpack.c.bf16 %v935_v4, %v934_v0  ;;  %1559 = vmatprep.subr.bf16.mxu0 %v4483_v3  ;;  %1369 = vmatpush2.bf16.msra.mxu1 %v4516_v63  ;;  %v4520_v4 = vld [vmem:[%s5708_s25 + $0x1a4] ss:$8 sps:$4 sm:$0xff]   ;;  %v4564_v63 = vld [vmem:[%s5708_s25 + $0x234] ss:$8 sps:$4 sm:$0xff]  }
 0x1bb   : > { %v777_v10 = vpop.permute.xlu1 %776  ;;  %1370 = vmatprep.subr.bf16.mxu1 %v4520_v4  ;;  %v4565_v4 = vld [vmem:[%s5708_s25 + $0x320] ss:$8 sps:$4 sm:$0xff]  }
 0x1bc   : > { %3813 = vmatmul.mubr.msk.bf16.gmra.mxu0 %vm1004_vm0, %v941_v8  ;;  %v799_v13 = vmul.f32 %v5798_v59, %v777_v10  ;;  %v4525_v8 = vld [vmem:[%s5708_s25 + $0x94] ss:$8 sps:$4 sm:$0xff]   ;;  %v4523_v10 = vld [vmem:[%s5708_s25 + $0x90] ss:$8 sps:$4 sm:$0xff]  }
 0x1bd   : > { %1069 = vmatprep.mubr.bf16.mxu0 %v5362_v11  ;;  %1560 = vmatpush1.bf16.msra.mxu0 %v4481_v7  ;;  %v895_v54 = vpop.permute.xlu0 %894 }
 0x1be   : > { %1561 = vmatprep.subr.bf16.mxu0 %v4489_v9  ;;  %v807_v17 = vadd.f32 %v799_v13, %v754_v12  ;;  %v908_v62 = vmul.f32 %v5810_v6, %v895_v54  ;;  %v4526_v12 = vld [vmem:[%s5708_s25 + $0x194] ss:$8 sps:$4 sm:$0xff]   ;;  %v4547_v54 = vld [vmem:[%s5708_s25 + $0x350] ss:$8 sps:$4 sm:$0xff]  }
 0x1c0   : > { %v830_v20 = vpop.permute.xlu1 %829 }
 0x1c1   : > { %v852_v22 = vmul.f32 %v5802_v61, %v830_v20  ;;  %1562 = vmatpush2.bf16.msra.mxu0 %v4487_v14 }
 0x1c2   : > { %1563 = vmatprep.subr.bf16.mxu0 %v4495_v15  ;;  %v4531_v15 = vld [vmem:[%s5708_s25 + $0x84] ss:$8 sps:$4 sm:$0xff]  }
 0x1c3   : > { %v860_v26 = vadd.f32 %v852_v22, %v807_v17  ;;  %v4537_v22 = vld [vmem:[%s5708_s25 + $0x374] ss:$8 sps:$4 sm:$0xff]  }
 0x1c4   : > { %v834_v27 = vpop.permute.xlu1 %833 }
 0x1c5   : > { %v853_v29 = vmul.f32 %v5802_v61, %v834_v27  ;;  %1564 = vmatpush2.bf16.msra.mxu0 %v4493_v23  ;;  %v913_v31 = vadd.f32 %v905_v24, %v860_v26  ;;  %v954_v23 = vlaneseq  ;;  %v952_v26 = vld [vmem:[#allocation10] sm:$0x3] }
 0x1c6   : > { %1565 = vmatprep.subr.bf16.mxu0 %v4501_v25 }
 0x1c7   : > { %v861_v33 = vadd.f32 %v853_v29, %v808_v28  ;;  %v928_v37 = vadd.f32 %v5814_v16, %v913_v31  ;;  %v955_v24 = vshrl.u32 %v954_v23, 7  ;;  %v4588_v23 = vld [vmem:[%s5708_s25 + $0x2f4] ss:$8 sps:$4 sm:$0xff]  }
 0x1c9   : > { %v887_v34 = vpop.permute.xlu1 %886  ;;  %1566 = vmatpush2.bf16.msra.mxu0 %v4499_v30  ;;  %v936_v42 = vmax.f32 %v928_v37, 0.0  ;;  %v5895_v25 = vsub.s32 0, %v955_v24  ;;  %v5897_v27 = vsub.s32 1, %v955_v24  ;;  %v4583_v24 = vld [vmem:[%s5708_s25 + $0x3f0] ss:$8 sps:$4 sm:$0xff]  }
 0x1ca   : > { %v906_v36 = vmul.f32 %v5810_v6, %v887_v34  ;;  %1567 = vmatprep.subr.bf16.mxu0 %v4507_v32 }
 0x1cb   : > { %v5900_v28 = vrot.slane %v952_v26, %v5895_v25  ;;  %v5903_v30 = vrot.slane %v952_v26, %v5897_v27  ;;  %v4591_v26 = vld [vmem:[%s5708_s25 + $0x3e4] ss:$8 sps:$4 sm:$0xff]  }
 0x1cc   : > { %v914_v39 = vadd.f32 %v906_v36, %v861_v33 }
 0x1cd   : > { %1568 = vmatpush2.bf16.msra.mxu0 %v4505_v35 }
 0x1ce   : > { %v929_v41 = vadd.f32 %v5814_v16, %v914_v39  ;;  %v739_v43 = vpop.permute.xlu1 %738  ;;  %1569 = vmatprep.subr.bf16.mxu0 %v4513_v38 }
 0x1cf   : > { %v756_v51 = vmul.f32 %v5800_v60, %v739_v43  ;;  %v4519_v60 = vld [vmem:[%s5708_s25 + $0xa4] ss:$8 sps:$4 sm:$0xff]  }
 0x1d0   : > { %v937_v45 = vmax.f32 %v929_v41, 0.0 }
 0x1d1   : > { %1570 = vmatpush2.bf16.msra.mxu0 %v4511_v40 }
 0x1d2   : > { %v942_v46 = vpack.c.bf16 %v937_v45, %v936_v42  ;;  %1571 = vmatprep.subr.bf16.mxu0 %v4519_v60  ;;  %v4543_v45 = vld [vmem:[%s5708_s25 + $0x364] ss:$8 sps:$4 sm:$0xff]  }
 0x1d3   : > { %v785_v47 = vpop.permute.xlu1 %784  ;;  %v4567_v60 = vld [vmem:[%s5708_s25 + $0x324] ss:$8 sps:$4 sm:$0xff]  }
 0x1d4   : > { %3814 = vmatmul.mubr.msk.bf16.gmra.mxu0 %vm1004_vm0, %v942_v46  ;;  %v801_v52 = vmul.f32 %v5798_v59, %v785_v47  ;;  %v4538_v47 = vld [vmem:[%s5708_s25 + $0x270] ss:$8 sps:$4 sm:$0xff]  }
 0x1d5   : > { %1079 = vmatprep.mubr.bf16.mxu0 %v5362_v11 }
 0x1d6   : > { %v809_v56 = vadd.f32 %v801_v52, %v756_v51  ;;  %v4549_v51 = vld [vmem:[%s5708_s25 + $0x354] ss:$8 sps:$4 sm:$0xff]   ;;  %v4544_v52 = vld [vmem:[%s5708_s25 + $0x260] ss:$8 sps:$4 sm:$0xff]  }
 0x1d7   : > { %v789_v49 = vpop.permute.xlu1 %788 }
 0x1d8   : > { %v802_v53 = vmul.f32 %v5798_v59, %v789_v49  ;;  %v862_v1 = vadd.f32 %v854_v58, %v809_v56  ;;  %v4517_v59 = vld [vmem:[%s5708_s25 + $0xa0] ss:$8 sps:$4 sm:$0xff]   ;;  %v4546_v49 = vld [vmem:[%s5708_s25 + $0x264] ss:$8 sps:$4 sm:$0xff]   ;;  %v4550_v56 = vld [vmem:[%s5708_s25 + $0x250] ss:$8 sps:$4 sm:$0xff]  }
 0x1d9   : > { %1572 = vmatpush2.bf16.msra.mxu0 %v4517_v59  ;;  %v4553_v58 = vld [vmem:[%s5708_s25 + $0x340] ss:$8 sps:$4 sm:$0xff]   ;;  %v4562_v59 = vld [vmem:[%s5708_s25 + $0x230] ss:$8 sps:$4 sm:$0xff]  }
 0x1da   : > { %v810_v55 = vadd.f32 %v802_v53, %v757_v50  ;;  %1573 = vmatprep.subr.bf16.mxu0 %v4525_v8  ;;  %v4541_v50 = vld [vmem:[%s5708_s25 + $0x360] ss:$8 sps:$4 sm:$0xff]   ;;  %v4552_v53 = vld [vmem:[%s5708_s25 + $0x254] ss:$8 sps:$4 sm:$0xff]  }
 0x1db   : > { %v4568_v8 = vld [vmem:[%s5708_s25 + $0x220] ss:$8 sps:$4 sm:$0xff]  }
 0x1dc   : > { %v842_v57 = vpop.permute.xlu1 %841 }
 0x1dd   : > { %v855_v11 = vmul.f32 %v5802_v61, %v842_v57  ;;  %v4522_v61 = vld [vmem:[%s5708_s25 + $0x1a0] ss:$8 sps:$4 sm:$0xff]   ;;  %1574 = vmatpush2.bf16.msra.mxu0 %v4523_v10  ;;  %v4558_v57 = vld [vmem:[%s5708_s25 + $0x244] ss:$8 sps:$4 sm:$0xff]  }
 0x1de   : > { %1371 = vmatpush2.bf16.msra.mxu1 %v4522_v61  ;;  %1575 = vmatprep.subr.bf16.mxu0 %v4531_v15  ;;  %v4573_v61 = vld [vmem:[%s5708_s25 + $0x314] ss:$8 sps:$4 sm:$0xff]   ;;  %v4574_v15 = vld [vmem:[%s5708_s25 + $0x210] ss:$8 sps:$4 sm:$0xff]  }
 0x1df   : > { %v863_v0 = vadd.f32 %v855_v11, %v810_v55  ;;  %1372 = vmatprep.subr.bf16.mxu1 %v4526_v12  ;;  %v4555_v55 = vld [vmem:[%s5708_s25 + $0x344] ss:$8 sps:$4 sm:$0xff]   ;;  %v4561_v11 = vld [vmem:[%s5708_s25 + $0x334] ss:$8 sps:$4 sm:$0xff]   ;;  %v4571_v12 = vld [vmem:[%s5708_s25 + $0x310] ss:$8 sps:$4 sm:$0xff]  }
 0x1e1   : > { %v891_v2 = vpop.permute.xlu1 %890  ;;  %v916_v3 = vadd.f32 %v908_v62, %v863_v0  ;;  %1576 = vmatpush2.bf16.msra.mxu0 %v4529_v18  ;;  %v4556_v62 = vld [vmem:[%s5708_s25 + $0x240] ss:$8 sps:$4 sm:$0xff]   ;;  %v4559_v0 = vld [vmem:[%s5708_s25 + $0x330] ss:$8 sps:$4 sm:$0xff]   ;;  %v4582_v18 = vld [vmem:[%s5708_s25 + $0x204] ss:$8 sps:$4 sm:$0xff]  }
 0x1e2   : > { %v907_v5 = vmul.f32 %v5810_v6, %v891_v2  ;;  %v4528_v6 = vld [vmem:[%s5708_s25 + $0x190] ss:$8 sps:$4 sm:$0xff]   ;;  %2019 = vmatprep.subr.bf16.mxu0 %v4537_v22  ;;  %v4570_v2 = vld [vmem:[%s5708_s25 + $0x224] ss:$8 sps:$4 sm:$0xff]   ;;  %v4580_v22 = vld [vmem:[%s5708_s25 + $0x200] ss:$8 sps:$4 sm:$0xff]  }
 0x1e3   : > { %v931_v7 = vadd.f32 %v5814_v16, %v916_v3  ;;  %1373 = vmatpush2.bf16.msra.mxu1 %v4528_v6  ;;  %v4579_v6 = vld [vmem:[%s5708_s25 + $0x304] ss:$8 sps:$4 sm:$0xff]  }
 0x1e4   : > { %v915_v9 = vadd.f32 %v907_v5, %v862_v1  ;;  %1374 = vmatprep.subr.bf16.mxu1 %v4532_v19  ;;  %v4577_v19 = vld [vmem:[%s5708_s25 + $0x300] ss:$8 sps:$4 sm:$0xff]  }
 0x1e5   : > { %v939_v14 = vmax.f32 %v931_v7, 0.0 }
 0x1e6   : > { %v930_v13 = vadd.f32 %v5814_v16, %v915_v9  ;;  %v4540_v16 = vld [vmem:[%s5708_s25 + $0x274] ss:$8 sps:$4 sm:$0xff]  }
 0x1e7   : > { %1375 = vmatpush2.bf16.msra.mxu1 %v4534_v21  ;;  %v4576_v9 = vld [vmem:[%s5708_s25 + $0x214] ss:$8 sps:$4 sm:$0xff]  }
 0x1e8   : > { %v938_v17 = vmax.f32 %v930_v13, 0.0  ;;  %1778 = vmatprep.subr.bf16.mxu1 %v4540_v16  ;;  %v4585_v21 = vld [vmem:[%s5708_s25 + $0x3f4] ss:$8 sps:$4 sm:$0xff]  }
 0x1ea   : > { %v943_v20 = vpack.c.bf16 %v939_v14, %v938_v17 }
 0x1ec   : > { %3815 = vmatmul.mubr.msk.bf16.gmra.mxu0 %vm1004_vm0, %v943_v20 }
 0x260   : > { %v1051_v29 = vpop.f32.mrf.mxu0 }
 0x261   : > { %v1052_v32 = vadd.f32 %v1051_v29, %v5900_v28  ;;  %v4586_v29 = vld [vmem:[%s5708_s25 + $0x2f0] ss:$8 sps:$4 sm:$0xff]  }
 0x262   : > { %v1053_v31 = vpop.f32.mrf.mxu0 }
 0x263   : > { %v1054_v34 = vadd.f32 %v1053_v31, %v5903_v30  ;;  %v1090_v39 = vmax.f32 %v1052_v32, 0.0  ;;  %v4594_v31 = vld [vmem:[%s5708_s25 + $0x2e4] ss:$8 sps:$4 sm:$0xff]   ;;  %v4589_v32 = vld [vmem:[%s5708_s25 + $0x3e0] ss:$8 sps:$4 sm:$0xff]  }
 0x264   : > { %v1055_v33 = vpop.f32.mrf.mxu0 }
 0x265   : > { %v1056_v35 = vadd.f32 %v1055_v33, %v5900_v28  ;;  %v1091_v40 = vmax.f32 %v1054_v34, 0.0  ;;  %v4597_v33 = vld [vmem:[%s5708_s25 + $0x3d4] ss:$8 sps:$4 sm:$0xff]   ;;  %v4592_v34 = vld [vmem:[%s5708_s25 + $0x2e0] ss:$8 sps:$4 sm:$0xff]  }
 0x266   : > { %v1057_v36 = vpop.f32.mrf.mxu0 }
 0x267   : > { %v1092_v37 = vmax.f32 %v1056_v35, 0.0  ;;  %v1058_v38 = vadd.f32 %v1057_v36, %v5903_v30  ;;  %v4600_v35 = vld [vmem:[%s5708_s25 + $0x2d4] ss:$8 sps:$4 sm:$0xff]   ;;  %v4595_v36 = vld [vmem:[%s5708_s25 + $0x3d0] ss:$8 sps:$4 sm:$0xff]  }
 0x269   : > { %v1093_v41 = vmax.f32 %v1058_v38, 0.0  ;;  %v1106_v42 = vpack.c.bf16 %v1092_v37, %v1090_v39  ;;  %v4603_v37 = vld [vmem:[%s5708_s25 + $0x3c4] ss:$8 sps:$4 sm:$0xff]   ;;  %v4598_v39 = vld [vmem:[%s5708_s25 + $0x2d0] ss:$8 sps:$4 sm:$0xff]  }
 0x26b   : > { %v1107_v43 = vpack.c.bf16 %v1093_v41, %v1091_v40  ;;  %v1180_v48 = vrot.slane %v1106_v42, 4  ;;  %v4606_v41 = vld [vmem:[%s5708_s25 + $0x2c4] ss:$8 sps:$4 sm:$0xff]  }
 0x26d   : > { %1577 = vmatprep.mubr.bf16.mxu0 %v1107_v43  ;;  %v1181_v46 = vrot.slane %v1107_v43, 4  ;;  %v4601_v43 = vld [vmem:[%s5708_s25 + $0x3c0] ss:$8 sps:$4 sm:$0xff]  }
 0x26e   : > { %1578 = vmatmul.mubr.bf16.vlgmr.msra.gmra.mxu0 %v1106_v42 }
 0x26f   : > { %2020 = vmatpush1.bf16.msra.mxu0 %v4535_v44  ;;  %1376 = vmatprep.mubr.bf16.mxu1 %v1181_v46  ;;  %v4609_v44 = vld [vmem:[%s5708_s25 + $0x3b4] ss:$8 sps:$4 sm:$0xff]   ;;  %v4604_v46 = vld [vmem:[%s5708_s25 + $0x2c0] ss:$8 sps:$4 sm:$0xff]  }
 0x270   : > { %1377 = vmatmul.mubr.bf16.vlgmr.msra.gmra.mxu1 %v1180_v48  ;;  %2021 = vmatprep.subr.bf16.mxu0 %v4543_v45 }
 0x271   : > { %1779 = vmatpush1.bf16.msra.mxu1 %v4538_v47 }
 0x272   : > { %1780 = vmatprep.subr.bf16.mxu1 %v4546_v49  ;;  %v4612_v49 = vld [vmem:[%s5708_s25 + $0x2b4] ss:$8 sps:$4 sm:$0xff]  }
 0x273   : > { %2022 = vmatpush1.bf16.msra.mxu0 %v4541_v50  ;;  %v4607_v50 = vld [vmem:[%s5708_s25 + $0x3b0] ss:$8 sps:$4 sm:$0xff]  }
 0x274   : > { %2023 = vmatprep.subr.bf16.mxu0 %v4549_v51 }
 0x275   : > { %1781 = vmatpush1.bf16.msra.mxu1 %v4544_v52  ;;  %v4615_v52 = vld [vmem:[%s5708_s25 + $0x3a4] ss:$8 sps:$4 sm:$0xff]  }
 0x276   : > { %1782 = vmatprep.subr.bf16.mxu1 %v4552_v53 }
 0x277   : > { %2024 = vmatpush1.bf16.msra.mxu0 %v4547_v54  ;;  %v4610_v54 = vld [vmem:[%s5708_s25 + $0x2b0] ss:$8 sps:$4 sm:$0xff]  }
 0x278   : > { %2025 = vmatprep.subr.bf16.mxu0 %v4555_v55 }
 0x279   : > { %1783 = vmatpush1.bf16.msra.mxu1 %v4550_v56  ;;  %v4618_v56 = vld [vmem:[%s5708_s25 + $0x2a4] ss:$8 sps:$4 sm:$0xff]  }
 0x27a   : > { %1784 = vmatprep.subr.bf16.mxu1 %v4558_v57  ;;  %v4613_v57 = vld [vmem:[%s5708_s25 + $0x3a0] ss:$8 sps:$4 sm:$0xff]  }
 0x27b   : > { %2026 = vmatpush1.bf16.msra.mxu0 %v4553_v58 }
 0x27c   : > { %2027 = vmatprep.subr.bf16.mxu0 %v4561_v11  ;;  %v5927_v1 = vpop.f32.mrf.mxu0 }
 0x27d   : > { %1785 = vmatpush1.bf16.msra.mxu1 %v4556_v62  ;;  %v1062_v62 = vadd.f32 %v5927_v1, %v5900_v28 }
 0x27e   : > { %1786 = vmatprep.subr.bf16.mxu1 %v4564_v63  ;;  %v1063_v3 = vpop.f32.mrf.mxu0 }
 0x27f   : > { %2028 = vmatpush1.bf16.msra.mxu0 %v4559_v0  ;;  %v1064_v5 = vadd.f32 %v1063_v3, %v5903_v30  ;;  %v4621_v0 = vld [vmem:[%s5708_s25 + $0x394] ss:$8 sps:$4 sm:$0xff]  }
 0x280   : > { %2029 = vmatprep.subr.bf16.mxu0 %v4567_v60  ;;  %v5934_v7 = vpop.f32.mrf.mxu0  ;;  %v4616_v60 = vld [vmem:[%s5708_s25 + $0x2a0] ss:$8 sps:$4 sm:$0xff]  }
 0x281   : > { %1787 = vmatpush1.bf16.msra.mxu1 %v4562_v59  ;;  %v1095_v13 = vmax.f32 %v1064_v5, 0.0  ;;  %v1066_v63 = vadd.f32 %v5934_v7, %v5900_v28  ;;  %v4624_v59 = vld [vmem:[%s5708_s25 + $0x294] ss:$8 sps:$4 sm:$0xff]   ;;  %v1094_v5 = vmax.f32 %v1062_v62, 0.0  ;;  %v4622_v7 = vld [vmem:[%s5708_s25 + $0x290] ss:$8 sps:$4 sm:$0xff]  }
 0x282   : > { %1788 = vmatprep.subr.bf16.mxu1 %v4570_v2  ;;  %v1067_v10 = vpop.f32.mrf.mxu0  ;;  %v4619_v2 = vld [vmem:[%s5708_s25 + $0x390] ss:$8 sps:$4 sm:$0xff]   ;;  %v4684_v62 = vld [vmem:[%s5708_s25 + $0x4f4] ss:$8 sps:$4 sm:$0xff]  }
 0x283   : > { %2030 = vmatpush1.bf16.msra.mxu0 %v4565_v4  ;;  %v1068_v14 = vadd.f32 %v1067_v10, %v5903_v30  ;;  %v1096_v1 = vmax.f32 %v1066_v63, 0.0  ;;  %v4679_v63 = vld [vmem:[%s5708_s25 + $0x5f0] ss:$8 sps:$4 sm:$0xff]  }
 0x284   : > { %2031 = vmatprep.subr.bf16.mxu0 %v4573_v61  ;;  %v4627_v61 = vld [vmem:[%s5708_s25 + $0x384] ss:$8 sps:$4 sm:$0xff]  }
 0x285   : > { %1789 = vmatpush1.bf16.msra.mxu1 %v4568_v8  ;;  %v1097_v17 = vmax.f32 %v1068_v14, 0.0  ;;  %v4630_v8 = vld [vmem:[%s5708_s25 + $0x284] ss:$8 sps:$4 sm:$0xff]   ;;  %v4628_v14 = vld [vmem:[%s5708_s25 + $0x280] ss:$8 sps:$4 sm:$0xff]  }
 0x286   : > { %1790 = vmatprep.subr.bf16.mxu1 %v4576_v9  ;;  %v4625_v9 = vld [vmem:[%s5708_s25 + $0x380] ss:$8 sps:$4 sm:$0xff]  }
 0x287   : > { %2032 = vmatpush1.bf16.msra.mxu0 %v4571_v12  ;;  %v1109_v20 = vpack.c.bf16 %v1097_v17, %v1095_v13  ;;  %v1108_v12 = vpack.c.bf16 %v1096_v1, %v1094_v5  ;;  %v4633_v13 = vld [vmem:[%s5708_s25 + $0x574] ss:$8 sps:$4 sm:$0xff]   ;;  %v4691_v1 = vld [vmem:[%s5708_s25 + $0x5d0] ss:$8 sps:$4 sm:$0xff]  }
 0x288   : > { %2033 = vmatprep.subr.bf16.mxu0 %v4579_v6  ;;  %v4636_v6 = vld [vmem:[%s5708_s25 + $0x474] ss:$8 sps:$4 sm:$0xff]  }
 0x289   : > { %1791 = vmatpush1.bf16.msra.mxu1 %v4574_v15  ;;  %1810 = vmatprep.mubr.bf16.mxu1 %v1109_v20  ;;  %v1856_v16 = vrot.slane %v1109_v20, 4  ;;  %v4631_v15 = vld [vmem:[%s5708_s25 + $0x570] ss:$8 sps:$4 sm:$0xff]   ;;  %v4696_v5 = vld [vmem:[%s5708_s25 + $0x4d4] ss:$8 sps:$4 sm:$0xff]  }
 0x28a   : > { %1792 = vmatprep.subr.bf16.mxu1 %v4582_v18  ;;  %v1855_v18 = vrot.slane %v1108_v12, 4 }
 0x28b   : > { %2034 = vmatpush1.bf16.msra.mxu0 %v4577_v19  ;;  %2051 = vmatprep.mubr.bf16.mxu0 %v1856_v16  ;;  %v4639_v19 = vld [vmem:[%s5708_s25 + $0x564] ss:$8 sps:$4 sm:$0xff]  }
 0x28c   : > { %2035 = vmatprep.subr.bf16.mxu0 %v4585_v21  ;;  %v4634_v21 = vld [vmem:[%s5708_s25 + $0x470] ss:$8 sps:$4 sm:$0xff]   ;;  %v4642_v16 = vld [vmem:[%s5708_s25 + $0x464] ss:$8 sps:$4 sm:$0xff]  }
 0x28d   : > { %1793 = vmatpush1.bf16.msra.mxu1 %v4580_v22 }
 0x28e   : > { %1794 = vmatprep.subr.bf16.mxu1 %v4588_v23 }
 0x28f   : > { %2036 = vmatpush2.bf16.msra.mxu0 %v4583_v24  ;;  %v4637_v24 = vld [vmem:[%s5708_s25 + $0x560] ss:$8 sps:$4 sm:$0xff]  }
 0x290   : > { %2037 = vmatprep.subr.bf16.mxu0 %v4591_v26  ;;  %v4645_v26 = vld [vmem:[%s5708_s25 + $0x554] ss:$8 sps:$4 sm:$0xff]  }
 0x291   : > { %1795 = vmatpush2.bf16.msra.mxu1 %v4586_v29 }
 0x292   : > { %1796 = vmatprep.subr.bf16.mxu1 %v4594_v31  ;;  %v4640_v31 = vld [vmem:[%s5708_s25 + $0x460] ss:$8 sps:$4 sm:$0xff]  }
 0x293   : > { %2038 = vmatpush2.bf16.msra.mxu0 %v4589_v32 }
 0x294   : > { %2039 = vmatprep.subr.bf16.mxu0 %v4597_v33  ;;  %v1071_v38 = vpop.f32.mrf.mxu0 }
 0x295   : > { %1797 = vmatpush2.bf16.msra.mxu1 %v4592_v34  ;;  %v1072_v40 = vadd.f32 %v1071_v38, %v5900_v28  ;;  %v4648_v34 = vld [vmem:[%s5708_s25 + $0x454] ss:$8 sps:$4 sm:$0xff]   ;;  %v4646_v38 = vld [vmem:[%s5708_s25 + $0x450] ss:$8 sps:$4 sm:$0xff]  }
 0x296   : > { %1798 = vmatprep.subr.bf16.mxu1 %v4600_v35  ;;  %v1073_v42 = vpop.f32.mrf.mxu0  ;;  %v4643_v35 = vld [vmem:[%s5708_s25 + $0x550] ss:$8 sps:$4 sm:$0xff]  }
 0x297   : > { %2040 = vmatpush2.bf16.msra.mxu0 %v4595_v36  ;;  %v1098_v47 = vmax.f32 %v1072_v40, 0.0  ;;  %v1074_v58 = vadd.f32 %v1073_v42, %v5903_v30  ;;  %v4654_v40 = vld [vmem:[%s5708_s25 + $0x444] ss:$8 sps:$4 sm:$0xff]   ;;  %v4652_v42 = vld [vmem:[%s5708_s25 + $0x440] ss:$8 sps:$4 sm:$0xff]  }
 0x298   : > { %2041 = vmatprep.subr.bf16.mxu0 %v4603_v37  ;;  %v1075_v45 = vpop.f32.mrf.mxu0  ;;  %v4651_v37 = vld [vmem:[%s5708_s25 + $0x544] ss:$8 sps:$4 sm:$0xff]  }
 0x299   : > { %1799 = vmatpush2.bf16.msra.mxu1 %v4598_v39  ;;  %v1076_v48 = vadd.f32 %v1075_v45, %v5900_v28  ;;  %v1099_v3 = vmax.f32 %v1074_v58, 0.0  ;;  %v4663_v45 = vld [vmem:[%s5708_s25 + $0x524] ss:$8 sps:$4 sm:$0xff]   ;;  %v4681_v58 = vld [vmem:[%s5708_s25 + $0x5f4] ss:$8 sps:$4 sm:$0xff]  }
 0x29a   : > { %1800 = vmatprep.subr.bf16.mxu1 %v4606_v41  ;;  %v1077_v53 = vpop.f32.mrf.mxu0  ;;  %v4657_v41 = vld [vmem:[%s5708_s25 + $0x534] ss:$8 sps:$4 sm:$0xff]  }
 0x29b   : > { %2042 = vmatpush2.bf16.msra.mxu0 %v4601_v43  ;;  %v1100_v51 = vmax.f32 %v1076_v48, 0.0  ;;  %v1078_v11 = vadd.f32 %v1077_v53, %v5903_v30  ;;  %v4660_v43 = vld [vmem:[%s5708_s25 + $0x434] ss:$8 sps:$4 sm:$0xff]   ;;  %v4661_v48 = vld [vmem:[%s5708_s25 + $0x520] ss:$8 sps:$4 sm:$0xff]  }
 0x29c   : > { %2043 = vmatprep.subr.bf16.mxu0 %v4609_v44  ;;  %v4655_v44 = vld [vmem:[%s5708_s25 + $0x530] ss:$8 sps:$4 sm:$0xff]   ;;  %v4675_v53 = vld [vmem:[%s5708_s25 + $0x504] ss:$8 sps:$4 sm:$0xff]  }
 0x29d   : > { %1801 = vmatpush2.bf16.msra.mxu1 %v4604_v46  ;;  %v5968_v55 = vpack.c.bf16 %v1100_v51, %v1098_v47  ;;  %v1101_v4 = vmax.f32 %v1078_v11, 0.0  ;;  %v4658_v46 = vld [vmem:[%s5708_s25 + $0x430] ss:$8 sps:$4 sm:$0xff]   ;;  %v4666_v47 = vld [vmem:[%s5708_s25 + $0x424] ss:$8 sps:$4 sm:$0xff]  }
 0x29e   : > { %1802 = vmatprep.subr.bf16.mxu1 %v4612_v49  ;;  %v4669_v49 = vld [vmem:[%s5708_s25 + $0x514] ss:$8 sps:$4 sm:$0xff]   ;;  %v4676_v11 = vld [vmem:[%s5708_s25 + $0x400] ss:$8 sps:$4 sm:$0xff]  }
 0x29f   : > { %2044 = vmatpush2.bf16.msra.mxu0 %v4607_v50  ;;  %v1111_v10 = vpack.c.bf16 %v1101_v4, %v1099_v3  ;;  %v4664_v50 = vld [vmem:[%s5708_s25 + $0x420] ss:$8 sps:$4 sm:$0xff]   ;;  %v4672_v51 = vld [vmem:[%s5708_s25 + $0x414] ss:$8 sps:$4 sm:$0xff]  }
 0x2a0   : > { %2045 = vmatprep.subr.bf16.mxu0 %v4615_v52  ;;  %v4667_v52 = vld [vmem:[%s5708_s25 + $0x510] ss:$8 sps:$4 sm:$0xff]   ;;  %v4693_v3 = vld [vmem:[%s5708_s25 + $0x5d4] ss:$8 sps:$4 sm:$0xff]   ;;  %v4688_v4 = vld [vmem:[%s5708_s25 + $0x4e0] ss:$8 sps:$4 sm:$0xff]  }
 0x2a1   : > { %1803 = vmatpush2.bf16.msra.mxu1 %v4610_v54  ;;  %v2332_v17 = vrot.slane %v1111_v10, 4  ;;  %v4670_v54 = vld [vmem:[%s5708_s25 + $0x410] ss:$8 sps:$4 sm:$0xff]  }
 0x2a2   : > { %1804 = vmatprep.subr.bf16.mxu1 %v4618_v56  ;;  %v4678_v56 = vld [vmem:[%s5708_s25 + $0x404] ss:$8 sps:$4 sm:$0xff]  }
 0x2a3   : > { %2046 = vmatpush2.bf16.msra.mxu0 %v4613_v57  ;;  %v4673_v57 = vld [vmem:[%s5708_s25 + $0x500] ss:$8 sps:$4 sm:$0xff]  }
 0x2a4   : > { %2047 = vmatprep.subr.bf16.mxu0 %v4621_v0  ;;  %v4687_v0 = vld [vmem:[%s5708_s25 + $0x5e4] ss:$8 sps:$4 sm:$0xff]  }
 0x2a5   : > { %1805 = vmatpush2.bf16.msra.mxu1 %v4616_v60  ;;  %v4682_v60 = vld [vmem:[%s5708_s25 + $0x4f0] ss:$8 sps:$4 sm:$0xff]  }
 0x2a6   : > { %1806 = vmatprep.subr.bf16.mxu1 %v4624_v59  ;;  %v4690_v59 = vld [vmem:[%s5708_s25 + $0x4e4] ss:$8 sps:$4 sm:$0xff]  }
 0x2a7   : > { %2048 = vmatpush2.bf16.msra.mxu0 %v4619_v2  ;;  %v4685_v2 = vld [vmem:[%s5708_s25 + $0x5e0] ss:$8 sps:$4 sm:$0xff]  }
 0x2a8   : > { %2049 = vmatprep.subr.bf16.mxu0 %v4627_v61  ;;  %v4699_v61 = vld [vmem:[%s5708_s25 + $0x5c4] ss:$8 sps:$4 sm:$0xff]  }
 0x2a9   : > { %1807 = vmatpush2.bf16.msra.mxu1 %v4622_v7  ;;  %v4694_v7 = vld [vmem:[%s5708_s25 + $0x4d0] ss:$8 sps:$4 sm:$0xff]  }
 0x2aa   : > { %1808 = vmatprep.subr.bf16.mxu1 %v4630_v8  ;;  %v4702_v8 = vld [vmem:[%s5708_s25 + $0x4c4] ss:$8 sps:$4 sm:$0xff]  }
 0x2ab   : > { %2050 = vmatpush2.bf16.msra.mxu0 %v4625_v9  ;;  %v4697_v9 = vld [vmem:[%s5708_s25 + $0x5c0] ss:$8 sps:$4 sm:$0xff]  }
 0x2ac   : > { %2495 = vmatprep.subr.bf16.mxu0 %v4633_v13  ;;  %v1081_v20 = vpop.f32.mrf.mxu0  ;;  %v4708_v13 = vld [vmem:[%s5708_s25 + $0x4b4] ss:$8 sps:$4 sm:$0xff]  }
 0x2ad   : > { %1809 = vmatpush2.bf16.msra.mxu1 %v4628_v14  ;;  %v1082_v22 = vadd.f32 %v1081_v20, %v5900_v28  ;;  %v4703_v14 = vld [vmem:[%s5708_s25 + $0x5b0] ss:$8 sps:$4 sm:$0xff]  }
 0x2ae   : > { %2052 = vmatmul.mubr.bf16.vlgmr.msra.gmra.mxu0 %v1855_v18  ;;  %2254 = vmatprep.subr.bf16.mxu1 %v4636_v6  ;;  %v5994_v23 = vpop.f32.mrf.mxu0  ;;  %v4711_v6 = vld [vmem:[%s5708_s25 + $0x5a4] ss:$8 sps:$4 sm:$0xff]  }
 0x2af   : > { %2496 = vmatpush1.bf16.msra.mxu0 %v4631_v15  ;;  %2527 = vmatprep.mubr.bf16.mxu0 %v2332_v17  ;;  %v1102_v32 = vmax.f32 %v1082_v22, 0.0  ;;  %v4706_v17 = vld [vmem:[%s5708_s25 + $0x4b0] ss:$8 sps:$4 sm:$0xff]   ;;  %v4714_v18 = vld [vmem:[%s5708_s25 + $0x4a4] ss:$8 sps:$4 sm:$0xff]   ;;  %v1084_v20 = vadd.f32 %v5994_v23, %v5903_v30 }
 0x2b0   : > { %1811 = vmatmul.mubr.bf16.vlgmr.msra.gmra.mxu1 %v1108_v12  ;;  %2497 = vmatprep.subr.bf16.mxu0 %v4639_v19  ;;  %v1085_v29 = vpop.f32.mrf.mxu0  ;;  %v4700_v12 = vld [vmem:[%s5708_s25 + $0x4c0] ss:$8 sps:$4 sm:$0xff]   ;;  %v4717_v22 = vld [vmem:[%s5708_s25 + $0x594] ss:$8 sps:$4 sm:$0xff]   ;;  %v4723_v23 = vld [vmem:[%s5708_s25 + $0x584] ss:$8 sps:$4 sm:$0xff]  }
 0x2b1   : > { %2255 = vmatpush1.bf16.msra.mxu1 %v4634_v21  ;;  %2286 = vmatprep.mubr.bf16.mxu1 %v1111_v10  ;;  %v1086_v33 = vadd.f32 %v1085_v29, %v5900_v28  ;;  %v4649_v28 = vld [vmem:[%s5708_s25 + $0x540] ss:$8 sps:$4 sm:$0xff]   ;;  %v4705_v10 = vld [vmem:[%s5708_s25 + $0x5b4] ss:$8 sps:$4 sm:$0xff]   ;;  %v1103_v29 = vmax.f32 %v1084_v20, 0.0 }
 0x2b2   : > { %2256 = vmatprep.subr.bf16.mxu1 %v4642_v16  ;;  %v1087_v15 = vpop.f32.mrf.mxu0  ;;  %v4709_v19 = vld [vmem:[%s5708_s25 + $0x5a0] ss:$8 sps:$4 sm:$0xff]   ;;  %v4798_v20 = vld [vmem:[%s5708_s25 + $0x6c4] ss:$8 sps:$4 sm:$0xff]  }
 0x2b3   : > { %2498 = vmatpush1.bf16.msra.mxu0 %v4637_v24  ;;  %v1104_v36 = vmax.f32 %v1086_v33, 0.0  ;;  %v1088_v21 = vadd.f32 %v1087_v15, %v5903_v30  ;;  %v4712_v16 = vld [vmem:[%s5708_s25 + $0x4a0] ss:$8 sps:$4 sm:$0xff]   ;;  %v4720_v24 = vld [vmem:[%s5708_s25 + $0x494] ss:$8 sps:$4 sm:$0xff]  }
 0x2b4   : > { %2499 = vmatprep.subr.bf16.mxu0 %v4645_v26  ;;  %v4715_v26 = vld [vmem:[%s5708_s25 + $0x590] ss:$8 sps:$4 sm:$0xff]   ;;  %v4721_v33 = vld [vmem:[%s5708_s25 + $0x580] ss:$8 sps:$4 sm:$0xff]   ;;  %v4792_v15 = vld [vmem:[%s5708_s25 + $0x6d4] ss:$8 sps:$4 sm:$0xff]  }
 0x2b5   : > { %2257 = vmatpush1.bf16.msra.mxu1 %v4640_v31  ;;  %v6004_v39 = vpack.c.bf16 %v1104_v36, %v1102_v32  ;;  %v1105_v31 = vmax.f32 %v1088_v21, 0.0  ;;  %v4718_v30 = vld [vmem:[%s5708_s25 + $0x490] ss:$8 sps:$4 sm:$0xff]   ;;  %v4726_v32 = vld [vmem:[%s5708_s25 + $0x484] ss:$8 sps:$4 sm:$0xff]  }
 0x2b6   : > { %2258 = vmatprep.subr.bf16.mxu1 %v4648_v34  ;;  %v4724_v36 = vld [vmem:[%s5708_s25 + $0x480] ss:$8 sps:$4 sm:$0xff]  }
 0x2b7   : > { %2500 = vmatpush1.bf16.msra.mxu0 %v4643_v35  ;;  %v1113_v34 = vpack.c.bf16 %v1105_v31, %v1103_v29  ;;  %v4729_v35 = vld [vmem:[%s5708_s25 + $0x774] ss:$8 sps:$4 sm:$0xff]   ;;  %v4793_v21 = vld [vmem:[%s5708_s25 + $0x7c0] ss:$8 sps:$4 sm:$0xff]   ;;  %v4807_v29 = vld [vmem:[%s5708_s25 + $0x7a4] ss:$8 sps:$4 sm:$0xff]  }
 0x2b8   : > { %2501 = vmatprep.subr.bf16.mxu0 %v4651_v37  ;;  %v4732_v37 = vld [vmem:[%s5708_s25 + $0x674] ss:$8 sps:$4 sm:$0xff]   ;;  %v4802_v31 = vld [vmem:[%s5708_s25 + $0x6b0] ss:$8 sps:$4 sm:$0xff]  }
 0x2b9   : > { %2259 = vmatpush1.bf16.msra.mxu1 %v4646_v38  ;;  %v4727_v38 = vld [vmem:[%s5708_s25 + $0x770] ss:$8 sps:$4 sm:$0xff]  }
 0x2ba   : > { %2260 = vmatprep.subr.bf16.mxu1 %v4654_v40  ;;  %v2808_v40 = vrot.slane %v1113_v34, 4 }
 0x2bb   : > { %2502 = vmatpush1.bf16.msra.mxu0 %v4649_v28  ;;  %v2331_v28 = vrot.slane %v5968_v55, 4 }
 0x2bc   : > { %2503 = vmatprep.subr.bf16.mxu0 %v4657_v41  ;;  %v4735_v41 = vld [vmem:[%s5708_s25 + $0x764] ss:$8 sps:$4 sm:$0xff]  }
 0x2bd   : > { %2261 = vmatpush1.bf16.msra.mxu1 %v4652_v42  ;;  %v4730_v42 = vld [vmem:[%s5708_s25 + $0x670] ss:$8 sps:$4 sm:$0xff]  }
 0x2be   : > { %2262 = vmatprep.subr.bf16.mxu1 %v4660_v43  ;;  %v4738_v43 = vld [vmem:[%s5708_s25 + $0x664] ss:$8 sps:$4 sm:$0xff]  }
 0x2bf   : > { %2504 = vmatpush1.bf16.msra.mxu0 %v4655_v44  ;;  %v4733_v44 = vld [vmem:[%s5708_s25 + $0x760] ss:$8 sps:$4 sm:$0xff]  }
 0x2c0   : > { %2505 = vmatprep.subr.bf16.mxu0 %v4663_v45  ;;  %v4741_v45 = vld [vmem:[%s5708_s25 + $0x754] ss:$8 sps:$4 sm:$0xff]  }
 0x2c1   : > { %2263 = vmatpush1.bf16.msra.mxu1 %v4658_v46  ;;  %v4736_v46 = vld [vmem:[%s5708_s25 + $0x660] ss:$8 sps:$4 sm:$0xff]  }
 0x2c2   : > { %2264 = vmatprep.subr.bf16.mxu1 %v4666_v47  ;;  %v4744_v47 = vld [vmem:[%s5708_s25 + $0x654] ss:$8 sps:$4 sm:$0xff]  }
 0x2c3   : > { %2506 = vmatpush1.bf16.msra.mxu0 %v4661_v48  ;;  %v4739_v48 = vld [vmem:[%s5708_s25 + $0x750] ss:$8 sps:$4 sm:$0xff]  }
 0x2c4   : > { %2507 = vmatprep.subr.bf16.mxu0 %v4669_v49  ;;  %v4747_v49 = vld [vmem:[%s5708_s25 + $0x744] ss:$8 sps:$4 sm:$0xff]  }
 0x2c5   : > { %2265 = vmatpush1.bf16.msra.mxu1 %v4664_v50  ;;  %v4742_v50 = vld [vmem:[%s5708_s25 + $0x650] ss:$8 sps:$4 sm:$0xff]  }
 0x2c6   : > { %2266 = vmatprep.subr.bf16.mxu1 %v4672_v51  ;;  %v4745_v51 = vld [vmem:[%s5708_s25 + $0x740] ss:$8 sps:$4 sm:$0xff]  }
 0x2c7   : > { %2508 = vmatpush1.bf16.msra.mxu0 %v4667_v52  ;;  %v4753_v52 = vld [vmem:[%s5708_s25 + $0x734] ss:$8 sps:$4 sm:$0xff]  }
 0x2c8   : > { %2509 = vmatprep.subr.bf16.mxu0 %v4675_v53  ;;  %v4748_v53 = vld [vmem:[%s5708_s25 + $0x640] ss:$8 sps:$4 sm:$0xff]  }
 0x2c9   : > { %2267 = vmatpush1.bf16.msra.mxu1 %v4670_v54  ;;  %v4756_v54 = vld [vmem:[%s5708_s25 + $0x634] ss:$8 sps:$4 sm:$0xff]  }
 0x2ca   : > { %2268 = vmatprep.subr.bf16.mxu1 %v4678_v56  ;;  %v4751_v56 = vld [vmem:[%s5708_s25 + $0x730] ss:$8 sps:$4 sm:$0xff]  }
 0x2cb   : > { %2510 = vmatpush1.bf16.msra.mxu0 %v4673_v57  ;;  %v4759_v57 = vld [vmem:[%s5708_s25 + $0x724] ss:$8 sps:$4 sm:$0xff]  }
 0x2cc   : > { %2511 = vmatprep.subr.bf16.mxu0 %v4681_v58  ;;  %v4754_v58 = vld [vmem:[%s5708_s25 + $0x630] ss:$8 sps:$4 sm:$0xff]  }
 0x2cd   : > { %2269 = vmatpush1.bf16.msra.mxu1 %v4676_v11  ;;  %v4762_v11 = vld [vmem:[%s5708_s25 + $0x624] ss:$8 sps:$4 sm:$0xff]  }
 0x2ce   : > { %2270 = vmatprep.subr.bf16.mxu1 %v4684_v62  ;;  %v4757_v62 = vld [vmem:[%s5708_s25 + $0x720] ss:$8 sps:$4 sm:$0xff]  }
 0x2cf   : > { %2512 = vmatpush2.bf16.msra.mxu0 %v4679_v63  ;;  %v4765_v63 = vld [vmem:[%s5708_s25 + $0x714] ss:$8 sps:$4 sm:$0xff]  }
 0x2d0   : > { %2513 = vmatprep.subr.bf16.mxu0 %v4687_v0  ;;  %v4760_v0 = vld [vmem:[%s5708_s25 + $0x620] ss:$8 sps:$4 sm:$0xff]  }
 0x2d1   : > { %2271 = vmatpush2.bf16.msra.mxu1 %v4682_v60  ;;  %v4768_v60 = vld [vmem:[%s5708_s25 + $0x614] ss:$8 sps:$4 sm:$0xff]  }
 0x2d2   : > { %2272 = vmatprep.subr.bf16.mxu1 %v4690_v59  ;;  %v4763_v59 = vld [vmem:[%s5708_s25 + $0x710] ss:$8 sps:$4 sm:$0xff]  }
 0x2d3   : > { %2514 = vmatpush2.bf16.msra.mxu0 %v4685_v2  ;;  %v4771_v2 = vld [vmem:[%s5708_s25 + $0x704] ss:$8 sps:$4 sm:$0xff]  }
 0x2d4   : > { %2515 = vmatprep.subr.bf16.mxu0 %v4693_v3  ;;  %v4766_v3 = vld [vmem:[%s5708_s25 + $0x610] ss:$8 sps:$4 sm:$0xff]  }
 0x2d5   : > { %2273 = vmatpush2.bf16.msra.mxu1 %v4688_v4  ;;  %v4774_v4 = vld [vmem:[%s5708_s25 + $0x604] ss:$8 sps:$4 sm:$0xff]  }
 0x2d6   : > { %2274 = vmatprep.subr.bf16.mxu1 %v4696_v5  ;;  %v4769_v5 = vld [vmem:[%s5708_s25 + $0x700] ss:$8 sps:$4 sm:$0xff]  }
 0x2d7   : > { %2516 = vmatpush2.bf16.msra.mxu0 %v4691_v1  ;;  %v4777_v1 = vld [vmem:[%s5708_s25 + $0x7f4] ss:$8 sps:$4 sm:$0xff]  }
 0x2d8   : > { %2517 = vmatprep.subr.bf16.mxu0 %v4699_v61  ;;  %v4772_v61 = vld [vmem:[%s5708_s25 + $0x600] ss:$8 sps:$4 sm:$0xff]  }
 0x2d9   : > { %2275 = vmatpush2.bf16.msra.mxu1 %v4694_v7  ;;  %v4780_v7 = vld [vmem:[%s5708_s25 + $0x6f4] ss:$8 sps:$4 sm:$0xff]  }
 0x2da   : > { %2276 = vmatprep.subr.bf16.mxu1 %v4702_v8  ;;  %v4775_v8 = vld [vmem:[%s5708_s25 + $0x7f0] ss:$8 sps:$4 sm:$0xff]  }
 0x2db   : > { %2518 = vmatpush2.bf16.msra.mxu0 %v4697_v9  ;;  %v4783_v9 = vld [vmem:[%s5708_s25 + $0x7e4] ss:$8 sps:$4 sm:$0xff]  }
 0x2dc   : > { %2519 = vmatprep.subr.bf16.mxu0 %v4705_v10  ;;  %v4778_v10 = vld [vmem:[%s5708_s25 + $0x6f0] ss:$8 sps:$4 sm:$0xff]  }
 0x2dd   : > { %2277 = vmatpush2.bf16.msra.mxu1 %v4700_v12  ;;  %v4786_v12 = vld [vmem:[%s5708_s25 + $0x6e4] ss:$8 sps:$4 sm:$0xff]  }
 0x2de   : > { %2278 = vmatprep.subr.bf16.mxu1 %v4708_v13  ;;  %v4781_v13 = vld [vmem:[%s5708_s25 + $0x7e0] ss:$8 sps:$4 sm:$0xff]  }
 0x2df   : > { %2520 = vmatpush2.bf16.msra.mxu0 %v4703_v14  ;;  %v4789_v14 = vld [vmem:[%s5708_s25 + $0x7d4] ss:$8 sps:$4 sm:$0xff]  }
 0x2e0   : > { %2521 = vmatprep.subr.bf16.mxu0 %v4711_v6  ;;  %v4784_v6 = vld [vmem:[%s5708_s25 + $0x6e0] ss:$8 sps:$4 sm:$0xff]  }
 0x2e1   : > { %2279 = vmatpush2.bf16.msra.mxu1 %v4706_v17  ;;  %v4787_v17 = vld [vmem:[%s5708_s25 + $0x7d0] ss:$8 sps:$4 sm:$0xff]  }
 0x2e2   : > { %2280 = vmatprep.subr.bf16.mxu1 %v4714_v18  ;;  %v4795_v18 = vld [vmem:[%s5708_s25 + $0x7c4] ss:$8 sps:$4 sm:$0xff]  }
 0x2e3   : > { %2522 = vmatpush2.bf16.msra.mxu0 %v4709_v19  ;;  %v4790_v19 = vld [vmem:[%s5708_s25 + $0x6d0] ss:$8 sps:$4 sm:$0xff]  }
 0x2e4   : > { %2523 = vmatprep.subr.bf16.mxu0 %v4717_v22  ;;  %v4801_v22 = vld [vmem:[%s5708_s25 + $0x7b4] ss:$8 sps:$4 sm:$0xff]  }
 0x2e5   : > { %2281 = vmatpush2.bf16.msra.mxu1 %v4712_v16  ;;  %v4796_v16 = vld [vmem:[%s5708_s25 + $0x6c0] ss:$8 sps:$4 sm:$0xff]  }
 0x2e6   : > { %2282 = vmatprep.subr.bf16.mxu1 %v4720_v24  ;;  %v4804_v24 = vld [vmem:[%s5708_s25 + $0x6b4] ss:$8 sps:$4 sm:$0xff]  }
 0x2e7   : > { %2524 = vmatpush2.bf16.msra.mxu0 %v4715_v26  ;;  %v4799_v26 = vld [vmem:[%s5708_s25 + $0x7b0] ss:$8 sps:$4 sm:$0xff]  }
 0x2e8   : > { %2525 = vmatprep.subr.bf16.mxu0 %v4723_v23  ;;  %v4810_v23 = vld [vmem:[%s5708_s25 + $0x6a4] ss:$8 sps:$4 sm:$0xff]  }
 0x2e9   : > { %2283 = vmatpush2.bf16.msra.mxu1 %v4718_v30  ;;  %v4805_v30 = vld [vmem:[%s5708_s25 + $0x7a0] ss:$8 sps:$4 sm:$0xff]  }
 0x2ea   : > { %2284 = vmatprep.subr.bf16.mxu1 %v4726_v32  ;;  %v4813_v32 = vld [vmem:[%s5708_s25 + $0x794] ss:$8 sps:$4 sm:$0xff]  }
 0x2eb   : > { %2526 = vmatpush2.bf16.msra.mxu0 %v4721_v33  ;;  %v4808_v33 = vld [vmem:[%s5708_s25 + $0x6a0] ss:$8 sps:$4 sm:$0xff]  }
 0x2ec   : > { %2971 = vmatprep.subr.bf16.mxu0 %v4729_v35  ;;  %v4811_v35 = vld [vmem:[%s5708_s25 + $0x790] ss:$8 sps:$4 sm:$0xff]  }
 0x2ed   : > { %2285 = vmatpush2.bf16.msra.mxu1 %v4724_v36  ;;  %v4819_v36 = vld [vmem:[%s5708_s25 + $0x784] ss:$8 sps:$4 sm:$0xff]  }
 0x2ee   : > { %2528 = vmatmul.mubr.bf16.vlgmr.msra.gmra.mxu0 %v2331_v28  ;;  %2730 = vmatprep.subr.bf16.mxu1 %v4732_v37  ;;  %v4814_v37 = vld [vmem:[%s5708_s25 + $0x690] ss:$8 sps:$4 sm:$0xff]   ;;  %v4820_v28 = vld [vmem:[%s5708_s25 + $0x680] ss:$8 sps:$4 sm:$0xff]  }
 0x2ef   : > { %2972 = vmatpush1.bf16.msra.mxu0 %v4727_v38  ;;  %3003 = vmatprep.mubr.bf16.mxu0 %v2808_v40  ;;  %v4822_v38 = vld [vmem:[%s5708_s25 + $0x684] ss:$8 sps:$4 sm:$0xff]   ;;  %v4817_v40 = vld [vmem:[%s5708_s25 + $0x780] ss:$8 sps:$4 sm:$0xff]  }
 0x2f0   : > { %2287 = vmatmul.mubr.bf16.vlgmr.msra.gmra.mxu1 %v5968_v55  ;;  %2973 = vmatprep.subr.bf16.mxu0 %v4735_v41  ;;  %v4750_v55 = vld [vmem:[%s5708_s25 + $0x644] ss:$8 sps:$4 sm:$0xff]   ;;  %v2807_v41 = vrot.slane %v6004_v39, 4 }
 0x2f1   : > { %2731 = vmatpush1.bf16.msra.mxu1 %v4730_v42  ;;  %2762 = vmatprep.mubr.bf16.mxu1 %v1113_v34  ;;  %v4816_v34 = vld [vmem:[%s5708_s25 + $0x694] ss:$8 sps:$4 sm:$0xff]  }
 0x2f2   : > { %2732 = vmatprep.subr.bf16.mxu1 %v4738_v43 }
 0x2f3   : > { %2974 = vmatpush1.bf16.msra.mxu0 %v4733_v44 }
 0x2f4   : > { %2975 = vmatprep.subr.bf16.mxu0 %v4741_v45 }
 0x2f5   : > { %2733 = vmatpush1.bf16.msra.mxu1 %v4736_v46 }
 0x2f6   : > { %2734 = vmatprep.subr.bf16.mxu1 %v4744_v47 }
 0x2f7   : > { %2976 = vmatpush1.bf16.msra.mxu0 %v4739_v48 }
 0x2f8   : > { %2977 = vmatprep.subr.bf16.mxu0 %v4747_v49 }
 0x2f9   : > { %2735 = vmatpush1.bf16.msra.mxu1 %v4742_v50 }
 0x2fa   : > { %2736 = vmatprep.subr.bf16.mxu1 %v4750_v55 }
 0x2fb   : > { %2978 = vmatpush1.bf16.msra.mxu0 %v4745_v51 }
 0x2fc   : > { %2979 = vmatprep.subr.bf16.mxu0 %v4753_v52 }
 0x2fd   : > { %2737 = vmatpush1.bf16.msra.mxu1 %v4748_v53 }
 0x2fe   : > { %2738 = vmatprep.subr.bf16.mxu1 %v4756_v54 }
 0x2ff   : > { %2980 = vmatpush1.bf16.msra.mxu0 %v4751_v56 }
 0x300   : > { %2981 = vmatprep.subr.bf16.mxu0 %v4759_v57 }
 0x301   : > { %2739 = vmatpush1.bf16.msra.mxu1 %v4754_v58 }
 0x302   : > { %2740 = vmatprep.subr.bf16.mxu1 %v4762_v11 }
 0x303   : > { %2982 = vmatpush1.bf16.msra.mxu0 %v4757_v62 }
 0x304   : > { %2983 = vmatprep.subr.bf16.mxu0 %v4765_v63 }
 0x305   : > { %2741 = vmatpush1.bf16.msra.mxu1 %v4760_v0 }
 0x306   : > { %2742 = vmatprep.subr.bf16.mxu1 %v4768_v60 }
 0x307   : > { %2984 = vmatpush1.bf16.msra.mxu0 %v4763_v59 }
 0x308   : > { %2985 = vmatprep.subr.bf16.mxu0 %v4771_v2 }
 0x309   : > { %2743 = vmatpush1.bf16.msra.mxu1 %v4766_v3 }
 0x30a   : > { %2744 = vmatprep.subr.bf16.mxu1 %v4774_v4 }
 0x30b   : > { %2986 = vmatpush1.bf16.msra.mxu0 %v4769_v5 }
 0x30c   : > { %2987 = vmatprep.subr.bf16.mxu0 %v4777_v1 }
 0x30d   : > { %2745 = vmatpush1.bf16.msra.mxu1 %v4772_v61 }
 0x30e   : > { %2746 = vmatprep.subr.bf16.mxu1 %v4780_v7 }
 0x30f   : > { %2988 = vmatpush2.bf16.msra.mxu0 %v4775_v8 }
 0x310   : > { %2989 = vmatprep.subr.bf16.mxu0 %v4783_v9 }
 0x311   : > { %2747 = vmatpush2.bf16.msra.mxu1 %v4778_v10 }
 0x312   : > { %2748 = vmatprep.subr.bf16.mxu1 %v4786_v12 }
 0x313   : > { %2990 = vmatpush2.bf16.msra.mxu0 %v4781_v13 }
 0x314   : > { %2991 = vmatprep.subr.bf16.mxu0 %v4789_v14 }
 0x315   : > { %2749 = vmatpush2.bf16.msra.mxu1 %v4784_v6 }
 0x316   : > { %2750 = vmatprep.subr.bf16.mxu1 %v4792_v15  ;;  %v3014_v15 = vld [vmem:[#allocation2] sm:$0xff] }
 0x317   : > { %2992 = vmatpush2.bf16.msra.mxu0 %v4787_v17 }
 0x318   : > { %2993 = vmatprep.subr.bf16.mxu0 %v4795_v18 }
 0x319   : > { %2751 = vmatpush2.bf16.msra.mxu1 %v4790_v19 }
 0x31a   : > { %2752 = vmatprep.subr.bf16.mxu1 %v4798_v20 }
 0x31b   : > { %2994 = vmatpush2.bf16.msra.mxu0 %v4793_v21  ;;  %v3015_v21 = vld [vmem:[#allocation2 + $0x8] sm:$0xff] }
 0x31c   : > { %2995 = vmatprep.subr.bf16.mxu0 %v4801_v22 }
 0x31d   : > { %2753 = vmatpush2.bf16.msra.mxu1 %v4796_v16 }
 0x31e   : > { %2754 = vmatprep.subr.bf16.mxu1 %v4804_v24 }
 0x31f   : > { %2996 = vmatpush2.bf16.msra.mxu0 %v4799_v26 }
 0x320   : > { %2997 = vmatprep.subr.bf16.mxu0 %v4807_v29 }
 0x321   : > { %2755 = vmatpush2.bf16.msra.mxu1 %v4802_v31 }
 0x322   : > { %2756 = vmatprep.subr.bf16.mxu1 %v4810_v23 }
 0x323   : > { %2998 = vmatpush2.bf16.msra.mxu0 %v4805_v30 }
 0x324   : > { %2999 = vmatprep.subr.bf16.mxu0 %v4813_v32 }
 0x325   : > { %2757 = vmatpush2.bf16.msra.mxu1 %v4808_v33 }
 0x326   : > { %2758 = vmatprep.subr.bf16.mxu1 %v4816_v34 }
 0x327   : > { %3000 = vmatpush2.bf16.msra.mxu0 %v4811_v35 }
 0x328   : > { %3001 = vmatprep.subr.bf16.mxu0 %v4819_v36 }
 0x329   : > { %2759 = vmatpush2.bf16.msra.mxu1 %v4814_v37 }
 0x32a   : > { %2760 = vmatprep.subr.bf16.mxu1 %v4822_v38 }
 0x32b   : > { %3002 = vmatpush2.bf16.msra.mxu0 %v4817_v40 }
 0x32d   : > { %2761 = vmatpush2.bf16.msra.mxu1 %v4820_v28 }
 0x32e   : > { %3004 = vmatmul.mubr.bf16.vlgmr.msra.gmra.mxu0 %v2807_v41  ;;  %v1579_v42 = vpop.f32.mrf.mxu0 }
 0x330   : > { %2763 = vmatmul.mubr.bf16.vlgmr.msra.gmra.mxu1 %v6004_v39  ;;  %v1378_v43 = vpop.f32.mrf.mxu1  ;;  %v1581_v44 = vpop.f32.mrf.mxu0 }
 0x331   : > { %v1580_v45 = vadd.f32 %v1579_v42, %v1378_v43 }
 0x332   : > { %v1380_v46 = vpop.f32.mrf.mxu1  ;;  %v1583_v47 = vpop.f32.mrf.mxu0 }
 0x333   : > { %v1582_v48 = vadd.f32 %v1581_v44, %v1380_v46 }
 0x334   : > { %v1382_v49 = vpop.f32.mrf.mxu1  ;;  %v1584_v50 = vpop.f32.mrf.mxu0 }
 0x336   : > { %v1383_v55 = vpop.f32.mrf.mxu1 }
 0x36e   : > { %v2053_v51 = vpop.f32.mrf.mxu0 }
 0x370   : > { %v1812_v52 = vpop.f32.mrf.mxu1  ;;  %v2055_v53 = vpop.f32.mrf.mxu0 }
 0x371   : > { %v1819_v54 = vadd.f32 %v1812_v52, %v1580_v45 }
 0x372   : > { %v1814_v56 = vpop.f32.mrf.mxu1  ;;  %v2057_v57 = vpop.f32.mrf.mxu0 }
 0x373   : > { %v1820_v58 = vadd.f32 %v1814_v56, %v1582_v48  ;;  %v2060_v11 = vadd.f32 %v2053_v51, %v1819_v54 }
 0x374   : > { %v1816_v62 = vpop.f32.mrf.mxu1  ;;  %v2058_v63 = vpop.f32.mrf.mxu0 }
 0x375   : > { %v2061_v39 = vadd.f32 %v2055_v53, %v1820_v58 }
 0x376   : > { %v1817_v0 = vpop.f32.mrf.mxu1 }
 0x3ae   : > { %v2529_v60 = vpop.f32.mrf.mxu0 }
 0x3b0   : > { %v2288_v59 = vpop.f32.mrf.mxu1  ;;  %v2531_v2 = vpop.f32.mrf.mxu0 }
 0x3b1   : > { %v2295_v3 = vadd.f32 %v2288_v59, %v2060_v11 }
 0x3b2   : > { %v2290_v4 = vpop.f32.mrf.mxu1  ;;  %v2533_v5 = vpop.f32.mrf.mxu0 }
 0x3b3   : > { %v2296_v1 = vadd.f32 %v2290_v4, %v2061_v39  ;;  %v2536_v61 = vadd.f32 %v2529_v60, %v2295_v3 }
 0x3b4   : > { %v2292_v7 = vpop.f32.mrf.mxu1  ;;  %v2534_v8 = vpop.f32.mrf.mxu0 }
 0x3b5   : > { %v2537_v9 = vadd.f32 %v2531_v2, %v2296_v1 }
 0x3b6   : > { %v2293_v10 = vpop.f32.mrf.mxu1 }
 0x3ee   : > { %v3005_v12 = vpop.f32.mrf.mxu0 }
 0x3f0   : > { %v2764_v13 = vpop.f32.mrf.mxu1  ;;  %v3007_v14 = vpop.f32.mrf.mxu0 }
 0x3f1   : > { %v2771_v6 = vadd.f32 %v2764_v13, %v2536_v61 }
 0x3f2   : > { %v2766_v17 = vpop.f32.mrf.mxu1  ;;  %v3009_v18 = vpop.f32.mrf.mxu0 }
 0x3f3   : > { %v3012_v19 = vadd.f32 %v3005_v12, %v2771_v6  ;;  %v2772_v20 = vadd.f32 %v2766_v17, %v2537_v9 }
 0x3f4   : > { %v2768_v22 = vpop.f32.mrf.mxu1  ;;  %v3010_v16 = vpop.f32.mrf.mxu0 }
 0x3f5   : > { %v3016_v24 = vadd.f32 %v3014_v15, %v3012_v19  ;;  %v3013_v26 = vadd.f32 %v3007_v14, %v2772_v20  ;;  %3023 = sbr.rel (%p4072_p10) target bundleno = 1687 (0x697), region = 162 }
 0x3f6   : > { %v2769_v29 = vpop.f32.mrf.mxu1 }
 0x3f7   : > { %3018 = vst [vmem:[#allocation2] sm:$0xff] %v3016_v24  ;;  %v3017_v31 = vadd.f32 %v3015_v21, %v3013_v26 }
 0x3f9   : > { %3019 = vst [vmem:[#allocation2 + $0x8] sm:$0xff] %v3017_v31 }
 0x3fa   : > { %v4823_v23 = vld [vmem:[#allocation14 + $0x74] ss:$8 sps:$4 sm:$0xff]   ;;  %v4825_v30 = vld [vmem:[#allocation14 + $0x70] ss:$8 sps:$4 sm:$0xff]   ;;  %v4826_v32 = vld [vmem:[#allocation14 + $0x64] ss:$8 sps:$4 sm:$0xff]  }
 0x3fb   : > { %3248 = vmatprep.subr.bf16.mxu0 %v4823_v23  ;;  %v4828_v33 = vld [vmem:[#allocation14 + $0x60] ss:$8 sps:$4 sm:$0xff]   ;;  %v4829_v34 = vld [vmem:[#allocation14 + $0x54] ss:$8 sps:$4 sm:$0xff]   ;;  %v4831_v35 = vld [vmem:[#allocation14 + $0x50] ss:$8 sps:$4 sm:$0xff]  }
 0x3fc   : > { %3249 = vmatpush1.bf16.msra.mxu0 %v4825_v30  ;;  %v4832_v36 = vld [vmem:[#allocation14 + $0x44] ss:$8 sps:$4 sm:$0xff]   ;;  %v4834_v37 = vld [vmem:[#allocation14 + $0x40] ss:$8 sps:$4 sm:$0xff]   ;;  %v4835_v38 = vld [vmem:[#allocation14 + $0x34] ss:$8 sps:$4 sm:$0xff]  }
 0x3fd   : > { %3250 = vmatprep.subr.bf16.mxu0 %v4826_v32  ;;  %v4837_v40 = vld [vmem:[#allocation14 + $0x30] ss:$8 sps:$4 sm:$0xff]   ;;  %v4838_v28 = vld [vmem:[#allocation14 + $0x24] ss:$8 sps:$4 sm:$0xff]   ;;  %v4840_v41 = vld [vmem:[#allocation14 + $0x20] ss:$8 sps:$4 sm:$0xff]  }
 0x3fe   : > { %v4841_v42 = vld [vmem:[#allocation14 + $0x14] ss:$8 sps:$4 sm:$0xff]   ;;  %v4843_v43 = vld [vmem:[#allocation14 + $0x10] ss:$8 sps:$4 sm:$0xff]   ;;  %v4844_v46 = vld [vmem:[#allocation14 + $0x4] ss:$8 sps:$4 sm:$0xff]  }
 0x3ff   : > { %v6129_v45 = vld [vmem:[#allocation13] sm:$0x3]  ;;  %v4846_v55 = vld [vmem:[#allocation14] ss:$8 sps:$4 sm:$0xff]   ;;  %v4873_v51 = vld [vmem:[%s6354_s1 + $0x70] sm:$0xff]   ;;  %v5365_v26 = vmov 0.0  }
 0x400   : > { %3251 = vmatpush1.bf16.msra.mxu0 %v4828_v33  ;;  %v3025_v44 = vld [vmem:[#allocation2 + $0x8] sm:$0xff]  ;;  %v3035_v47 = vrot.slane %v6129_v45, %v5897_v27  ;;  %v4871_v48 = vld [vmem:[%s6354_s1 + $0x78] sm:$0xff]   ;;  %v4874_v53 = vld [vmem:[%s6354_s1 + $0x30] sm:$0xff]   ;;  %v3031_v10 = vrot.slane %v6129_v45, %v5895_v25  ;;  %vm5366_vm1 = vmmov 0  }
 0x401   : > { %3252 = vmatprep.subr.bf16.mxu0 %v4829_v34  ;;  %v4872_v50 = vld [vmem:[%s6354_s1 + $0x38] sm:$0xff]   ;;  %4135 = vmatprep.subr.bf16.mxu1 %v4871_v48  ;;  %v4875_v54 = vld [vmem:[%s6354_s1 + $0x68] sm:$0xff]   ;;  %v4877_v62 = vld [vmem:[%s6354_s1 + $0x60] sm:$0xff]  }
 0x402   : > { %v3039_v49 = vadd.f32 %v3035_v47, %v3025_v44  ;;  %4136 = vmatpush3.bf16.msra.mxu1 %v4872_v50  ;;  %v4847_v56 = vld [vmem:[#allocation14 + $0xf4] ss:$8 sps:$4 sm:$0xff]   ;;  %v4849_v58 = vld [vmem:[#allocation14 + $0xf0] ss:$8 sps:$4 sm:$0xff]   ;;  %v4850_v63 = vld [vmem:[#allocation14 + $0xe4] ss:$8 sps:$4 sm:$0xff]  }
 0x403   : > { %4137 = vmatprep.subr.bf16.mxu1 %v4873_v51  ;;  %v4876_v11 = vld [vmem:[%s6354_s1 + $0x28] sm:$0xff]   ;;  %v4852_v39 = vld [vmem:[#allocation14 + $0xe0] ss:$8 sps:$4 sm:$0xff]   ;;  %v4881_v4 = vld [vmem:[%s6354_s1 + $0x50] sm:$0xff]  }
 0x404   : > { %3253 = vmatpush1.bf16.msra.mxu0 %v4831_v35  ;;  %v3041_v52 = vmax.f32 %v3039_v49, 0.0  ;;  %v4853_v0 = vld [vmem:[#allocation14 + $0xd4] ss:$8 sps:$4 sm:$0xff]   ;;  %v4878_v60 = vld [vmem:[%s6354_s1 + $0x20] sm:$0xff]   ;;  %v4855_v3 = vld [vmem:[#allocation14 + $0xd0] ss:$8 sps:$4 sm:$0xff]  }
 0x405   : > { %3254 = vmatprep.subr.bf16.mxu0 %v4832_v36  ;;  %v4879_v59 = vld [vmem:[%s6354_s1 + $0x58] sm:$0xff]   ;;  %v4882_v1 = vld [vmem:[%s6354_s1 + $0x10] sm:$0xff]   ;;  %v3024_v13 = vld [vmem:[#allocation2] sm:$0xff] }
 0x406   : > { %v3043_v57 = vpack.c.bf16 %v3041_v52, %v3041_v52  ;;  %4138 = vmatpush3.bf16.msra.mxu1 %v4874_v53  ;;  %v4880_v2 = vld [vmem:[%s6354_s1 + $0x18] sm:$0xff]   ;;  %v4861_v8 = vld [vmem:[#allocation14 + $0xb0] ss:$8 sps:$4 sm:$0xff]   ;;  %v3038_v6 = vadd.f32 %v3031_v10, %v3024_v13  ;;  %v4885_v16 = vld [vmem:[%s6354_s1 + $0x40] sm:$0xff]  }
 0x407   : > { %4139 = vmatprep.subr.bf16.mxu1 %v4875_v54  ;;  %v4856_v5 = vld [vmem:[#allocation14 + $0xc4] ss:$8 sps:$4 sm:$0xff]   ;;  %v4858_v61 = vld [vmem:[#allocation14 + $0xc0] ss:$8 sps:$4 sm:$0xff]   ;;  %v4859_v7 = vld [vmem:[#allocation14 + $0xb4] ss:$8 sps:$4 sm:$0xff]  }
 0x408   : > { %3255 = vmatpush1.bf16.msra.mxu0 %v4834_v37  ;;  %3280 = vmatprep.mubr.bf16.mxu0 %v3043_v57  ;;  %v4862_v9 = vld [vmem:[#allocation14 + $0xa4] ss:$8 sps:$4 sm:$0xff]   ;;  %v4864_v12 = vld [vmem:[#allocation14 + $0xa0] ss:$8 sps:$4 sm:$0xff]   ;;  %v4865_v14 = vld [vmem:[#allocation14 + $0x94] ss:$8 sps:$4 sm:$0xff]  }
 0x409   : > { %3256 = vmatprep.subr.bf16.mxu0 %v4835_v38  ;;  %v4867_v15 = vld [vmem:[#allocation14 + $0x90] ss:$8 sps:$4 sm:$0xff]   ;;  %v4868_v17 = vld [vmem:[#allocation14 + $0x84] ss:$8 sps:$4 sm:$0xff]   ;;  %v3040_v18 = vmax.f32 %v3038_v6, 0.0 }
 0x40a   : > { %4140 = vmatpush3.bf16.msra.mxu1 %v4876_v11  ;;  %v4870_v19 = vld [vmem:[#allocation14 + $0x80] ss:$8 sps:$4 sm:$0xff]   ;;  %v4883_v21 = vld [vmem:[%s6354_s1 + $0x48] sm:$0xff]   ;;  %v4122_v51 = vld [vmem:[#allocation20] ss:$0 sm:$0xff] }
 0x40b   : > { %4141 = vmatprep.subr.bf16.mxu1 %v4877_v62  ;;  %v3042_v20 = vpack.c.bf16 %v3040_v18, %v3040_v18  ;;  %v4884_v22 = vld [vmem:[%s6354_s1 + $0x8] sm:$0xff]   ;;  %v4886_v24 = vld [vmem:[%s6354_s1] sm:$0xff]   ;;  %v3076_v29 = vld [vmem:[#allocation15] sm:$0x3] }
 0x40c   : > { %3257 = vmatpush1.bf16.msra.mxu0 %v4837_v40  ;;  %v3081_v31 = vrot.slane %v3076_v29, %v5895_v25  ;;  %v3085_v23 = vrot.slane %v3076_v29, %v5897_v27  ;;  %v4889_v25 = vld [vmem:[#allocation18 + $0x8] sm:$0xff]   ;;  %v4890_v27 = vld [vmem:[#allocation18] sm:$0xff]   ;;  %v4105_v44 = vld [vmem:[#allocation17] ss:$0 sm:$0xff] }
 0x40d   : > { %3258 = vmatprep.subr.bf16.mxu0 %v4838_v28  ;;  %v4887_v28 = vld [vmem:[#allocation18 + $0x18] sm:$0xff]  }
 0x40e   : > { %4142 = vmatpush3.bf16.msra.mxu1 %v4878_v60 }
 0x40f   : > { %4143 = vmatprep.subr.bf16.mxu1 %v4879_v59 }
 0x410   : > { %3259 = vmatpush1.bf16.msra.mxu0 %v4840_v41 }
 0x411   : > { %3260 = vmatprep.subr.bf16.mxu0 %v4841_v42  ;;  %v4888_v42 = vld [vmem:[#allocation18 + $0x10] sm:$0xff]  }
 0x412   : > { %4144 = vmatpush3.bf16.msra.mxu1 %v4880_v2 }
 0x413   : > { %4145 = vmatprep.subr.bf16.mxu1 %v4881_v4 }
 0x414   : > { %3261 = vmatpush1.bf16.msra.mxu0 %v4843_v43 }
 0x415   : > { %3262 = vmatprep.subr.bf16.mxu0 %v4844_v46 }
 0x416   : > { %4146 = vmatpush3.bf16.msra.mxu1 %v4882_v1 }
 0x417   : > { %4147 = vmatprep.subr.bf16.mxu1 %v4883_v21 }
 0x418   : > { %3263 = vmatpush1.bf16.msra.mxu0 %v4846_v55 }
 0x419   : > { %3264 = vmatprep.subr.bf16.mxu0 %v4847_v56 }
 0x41a   : > { %4148 = vmatpush3.bf16.msra.mxu1 %v4884_v22 }
 0x41b   : > { %4149 = vmatprep.subr.bf16.mxu1 %v4885_v16 }
 0x41c   : > { %3265 = vmatpush2.bf16.msra.mxu0 %v4849_v58 }
 0x41d   : > { %3266 = vmatprep.subr.bf16.mxu0 %v4850_v63 }
 0x41e   : > { %4150 = vmatpush3.bf16.msra.mxu1 %v4886_v24 }
 0x41f   : > { %4162 = vmatprep.subr.bf16.mxu1 %v5365_v26 }
 0x420   : > { %3267 = vmatpush2.bf16.msra.mxu0 %v4852_v39 }
 0x421   : > { %3268 = vmatprep.subr.bf16.mxu0 %v4853_v0 }
 0x424   : > { %3269 = vmatpush2.bf16.msra.mxu0 %v4855_v3 }
 0x425   : > { %3270 = vmatprep.subr.bf16.mxu0 %v4856_v5 }
 0x428   : > { %3271 = vmatpush2.bf16.msra.mxu0 %v4858_v61 }
 0x429   : > { %3272 = vmatprep.subr.bf16.mxu0 %v4859_v7 }
 0x42c   : > { %3273 = vmatpush2.bf16.msra.mxu0 %v4861_v8 }
 0x42d   : > { %3274 = vmatprep.subr.bf16.mxu0 %v4862_v9 }
 0x430   : > { %3275 = vmatpush2.bf16.msra.mxu0 %v4864_v12 }
 0x431   : > { %3276 = vmatprep.subr.bf16.mxu0 %v4865_v14 }
 0x434   : > { %3277 = vmatpush2.bf16.msra.mxu0 %v4867_v15 }
 0x435   : > { %3278 = vmatprep.subr.bf16.mxu0 %v4868_v17 }
 0x438   : > { %3279 = vmatpush2.bf16.msra.mxu0 %v4870_v19 }
 0x43b   : > { %3281 = vmatmul.mubr.bf16.vlgmr.msra.gmra.mxu0 %v3042_v20 }
 0x4fb   : > { %v3282_v30 = vpop.f32.mrf.mxu0 }
 0x4fc   : > { %v3283_v32 = vadd.f32 %v3282_v30, %v3081_v31 }
 0x4fd   : > { %v3284_v33 = vpop.f32.mrf.mxu0 }
 0x4fe   : > { %v3285_v34 = vadd.f32 %v3284_v33, %v3085_v23  ;;  %v3289_v35 = vmax.f32 %v3283_v32, 0.0 }
 0x4ff   : > { %v3286_v36 = vpop.f32.mrf.mxu0 }
 0x500   : > { %v3290_v37 = vmax.f32 %v3285_v34, 0.0  ;;  %v3291_v41 = vpack.c.bf16 %v3289_v35, %v3289_v35 }
 0x501   : > { %v3287_v38 = vpop.f32.mrf.mxu0 }
 0x502   : > { %v3292_v40 = vpack.c.bf16 %v3290_v37, %v3290_v37 }
 0x504   : > { %3460 = vmatprep.mubr.bf16.mxu1 %v3292_v40 }
 0x505   : > { %3461 = vmatmul.mubr.bf16.vlgmr.msra.gmra.mxu1 %v3291_v41 }
 0x506   : > { %4163 = vmatpush3.bf16.msra.mxu1 %v4887_v28  ;;  %4170 = vmatprep.mubr.msk.bf16.mxu1 %vm5366_vm1, %v5365_v26 }
 0x507   : > { %4164 = vmatprep.subr.bf16.mxu1 %v5365_v26 }
 0x50a   : > { %4165 = vmatpush3.bf16.msra.mxu1 %v4888_v42 }
 0x50b   : > { %4166 = vmatprep.subr.bf16.mxu1 %v5365_v26 }
 0x50e   : > { %4167 = vmatpush3.bf16.msra.mxu1 %v4889_v25 }
 0x50f   : > { %4168 = vmatprep.subr.bf16.mxu1 %v5365_v26 }
 0x512   : > { %4169 = vmatpush3.bf16.msra.mxu1 %v4890_v27 }
 0x5c5   : > { %v4151_v43 = vpop.f32.mrf.mxu1 }
 0x5c7   : > { %v4152_v45 = vpop.f32.mrf.mxu1 }
 0x5c8   : > { %v4153_v46 = vadd.f32 %v4152_v45, %v4151_v43 }
 0x5c9   : > { %v4154_v47 = vpop.f32.mrf.mxu1 }
 0x5ca   : > { %v3463_v48 = vadd.f32 %v4153_v46, %v4105_v44 }
 0x5cb   : > { %v4155_v49 = vpop.f32.mrf.mxu1 }
 0x5cc   : > { %v3468_v50 = vmax.f32 %v3463_v48, 0.0 }
 0x5ce   : > { %v3469_v55 = vpack.c.bf16 %v3468_v50, %v3468_v50 }
 0x5d0   : > { %4171 = vmatmul.mubr.msk.bf16.vlgmr.msra.gmra.mxu1 %vm1004_vm0, %v3469_v55 }
 0x690   : > { %v3546_v52 = vpop.f32.mrf.mxu1 }
 0x691   : > { %v3547_v53 = vadd.f32 %v4122_v51, %v3546_v52 }
 0x692   : > { %v4172_v54 = vpop.f32.mrf.mxu1 }
 0x693   : > { %3552 = vst [vmem:[%s687_s17] sm:$0xff] %v3547_v53 }
 0x694   : > { %v3549_v56 = vpop.f32.mrf.mxu1 }
 0x696   : > { %v4173_v57 = vpop.f32.mrf.mxu1 }
 0x697 PF: > { %s6355_s18 = sld [smem:[#allocation35_spill]]  ;;  %s3567_s27 = sshll.u32 %s687_s17, 4  ;;  %s3568_s27 = int_to_ptr.vmem [resolvable:$true] %s3567_s27 }
 0x698   : > { %s6356_s2 = sld [smem:[#allocation53_spill]]  ;;  %s3554_s4 = scalar_lea.sflag [#allocation6], %s685_s22 }
 0x699   : > { %s5177_s13 = scalar_lea.vmem %s3568_s27, 128  ;;  %p6357_p5 = scmp.ne.s32.totalorder %s6314_s5, 0 }
 0x69a   : > { %p5178_p9 = scmp.ne.s32.totalorder %s3568_s27, %s5177_s13  ;;  %s5367_s6 = smov [#allocation21]  }
 0x69b   : > { %s5181_s7 = sshll.u32 %s5367_s6, 4  ;;  %s5182_s7 = int_to_ptr.vmem [resolvable:$false] %s5181_s7 }
 0x69c   : > { %p5179_p13 = pnand %p5178_p9, %p6357_p5  ;;  %s5183_s14 = scalar_lea.vmem %s5182_s7, 256 }
 0x69d   : > { %s4129_s16 = sshll.u32 %s6355_s18, 7  ;;  %p5184_p12 = scmp.lt.s32.totalorder %s3568_s27, %s5182_s7 }
 0x69e   : > { %s3565_s0 = scalar_lea.hbm %s6356_s2, %s4129_s16  ;;  %p5180_p0 = pneg %p5179_p13 }
 0x69f   : > { %p5185_p7 = scmp.lt.s32.totalorder %s5183_s14, %s5177_s13 }
 0x6a1   : > { %p5186_p3 = por %p5185_p7, %p5184_p12 }
 0x6a3   : > { %p5187_p8 = pnand %p5186_p3, %p5180_p0 }
 0x6a5   : > { %5190 = shalt.err (!%p5187_p8)
}
 0x6a6   : > { %s5191_s28 = scalar_lea.hbm %s3565_s0, 128  ;;  %s5195_s17 = scalar_lea.hbm %s6356_s2, 256 }
 0x6a7   : > { %p5192_p4 = scmp.ne.s32.totalorder %s3565_s0, %s5191_s28  ;;  %p5196_p2 = scmp.lt.s32.totalorder %s3565_s0, %s6356_s2 }
 0x6a8   : > { %p5197_p6 = scmp.lt.s32.totalorder %s5195_s17, %s5191_s28 }
 0x6a9   : > { %p5193_p11 = pnand %p5192_p4, %p6357_p5 }
 0x6aa   : > { %p5198_p10 = por %p5197_p6, %p5196_p2 }
 0x6ab   : > { %p5194_p1 = pneg %p5193_p11 }
 0x6ad   : > { %p5199_p9 = pnand %p5198_p10, %p5194_p1 }
 0x6af   : > { %5202 = shalt.err (!%p5199_p9)
}
 0x6b0   : > { %4216 = dma.vmem_to_hbm [thread:$0]  (%p6357_p5), %s3568_s27, 128, %s3565_s0, %s3554_s4  }
 0x6b1 PF: > { %s6358_s21 = sld [smem:[#allocation31_spill]]  ;;  %p4273_p13 = scmp.ge.s32.totalorder %s5341_s20, 2 }
 0x6b2   : > { %s6359_s18 = sld [smem:[#allocation43_spill]] }
 0x6b7   : > { %s3579_s16 = sand.u32 1, %s6358_s21  }
 0x6b8   : > { %p6360_p0 = scmp.ne.s32.totalorder %s6359_s18, 0  ;;  %s3580_s23 = scalar_lea.sflag [#allocation6], %s3579_s16 }
 0x6ba   : > { %p4250_p12 = pnand %p4273_p13, %p6360_p0 }
 0x6bc   : > { %p4251_p7 = pneg %p4250_p12 }
 0x6be   : > { %5288 = dma.done.wait (%p4251_p7), %s3580_s23, 128  }
 0x6bf   : > { %5290 = vsyncadd (%p4251_p7), %s3580_s23, 4294967168  ;;  %s31_s20 = sadd.s32 1, %s5341_s20   ;;  %s6362_s5 = sld [smem:[#allocation32_spill]] }
 0x6c0   : > { %p6213_p3 = scmp.ge.s32.totalorder %s31_s20, 6   ;;  %s6363_s27 = sld [smem:[#allocation42_spill]] }
 0x6c1   : > { %s6364_s0 = sld [smem:[#allocation40_spill]]  ;;  %s6369_s25 = smov %s5297_s26 }
 0x6c2   : > { %s6365_s4 = sld [smem:[#allocation41_spill]]  ;;  %s6371_s28 = smov %s5309_s29 }
 0x6c3   : > { %s6366_s16 = sld [smem:[#allocation36_spill]]  ;;  %s6372_s29 = smov %s5313_s30 }
 0x6c4   : > { %s6367_s18 = sld [smem:[#allocation37_spill]]  ;;  %s6374_s14 = smov %s5321_s15 }
 0x6c5   : > { %s6368_s13 = sld [smem:[#allocation39_spill]]  ;;  %s6370_s26 = smov %s6362_s5 }
 0x6c6   : > { %s6376_s17 = smov %s5337_s19 }
 0x6c7   : > { %s6373_s30 = smov %s6364_s0  ;;  %30 = sbr.rel (!%p6213_p3) target bundleno = 24 (0x18), region = 210 }
 0x6c8   : > { %s6375_s15 = smov %s6365_s4 }
 0x6cb   : > { %s6377_s19 = smov %s6368_s13 }
 0x6cc   :  { %3585 = vsyncpa [#allocation5], 1 }
 0x6cd   :  { %3587 = vsyncpa [#allocation5 + $0x1], 1 }
 0x6ce   :  { %3588 = vsyncpa [#allocation8], 1 }
 0x6cf   :  { %3589 = vsyncpa [#allocation11], 1 }
 0x6d0   :  { %3590 = vsyncpa [#allocation16], 1 }
 0x6d1   :  { %3591 = vsyncpa [#allocation19], 1 }
 0x6d2   :  { %3592 = vsyncpa [#allocation6], 1 }
 0x6d3   :  { %3594 = vsyncpa [#allocation6 + $0x1], 1 }

</bundles_post_ra>
